<compile_context>
chip_gen: v6e
topology: v6e:2x2x1
jax: 0.10.0
libtpu: 0.0.40
codegen_flags: <defaults>
</compile_context>

<pallas_src>
import math
import functools

import jax
import jax.numpy as jnp
from jax.experimental import pallas as pl
from jax.experimental.pallas import tpu as pltpu


def _round_up(x, m):
    return (x + m - 1) // m * m


def _detect_vmem_capacity_bytes():
    """Best-effort per-core VMEM capacity; conservative 64 MiB (v7x) fallback."""
    cap = 64 * 1024 * 1024
    try:
        info = pltpu.get_tpu_info()
        c = int(getattr(info, "vmem_capacity_bytes", 0) or 0)
        if c > 0:
            cap = c
    except Exception:
        pass
    return cap


def _estimate_vmem_bytes(bt, lp, d, ffn, n_heads, fin):
    """Rough per-block VMEM working set of the fused encoder-stack kernel."""
    r = bt * lp
    resident = (r * fin * 4            # raw-feature block (f32), resident across layers
                + fin * d * 2          # w_feat (bf16), resident
                + (lp + 1) * d * 4     # positional encoding + embed bias
                + bt * lp * 4          # key-padding bias
                + r * d * 4)           # resident output block (layer carry)
    per_layer_w = 2 * (4 * d * d + 2 * d * ffn) + 4 * (6 * d + ffn)
    streamed = 2 * per_layer_w         # double-buffered layer-weight pipeline
    attn_scores = 8 * r * n_heads * lp            # scores + probs (f32)
    attn_peak = max(r * d * (4 + 2 + 12),         # x + x_bf16 + qkv_f32
                    r * d * (4 + 6 + 2) + attn_scores)
    ffn_peak = r * d * (4 + 4 + 2) + r * ffn * 6
    return resident + streamed + max(attn_peak, ffn_peak)


def _pick_batch_tile(B, lp, d, ffn, n_heads, fin, vmem_budget, min_blocks=1):
    """Largest divisor Bt of B whose working set fits `vmem_budget`, leaving at
    least `min_blocks` grid blocks (use min_blocks=2 on v7x so both TensorCores
    get work).  Fewer, bigger blocks re-stream the layer-weight stack from HBM
    fewer times — the dominant lever on single-TC v5e/v6e."""
    best = 1
    for bt in range(1, B + 1):
        if B % bt:
            continue
        if B // bt < min_blocks:
            continue
        if _estimate_vmem_bytes(bt, lp, d, ffn, n_heads, fin) <= vmem_budget:
            best = bt
    return best


def _layernorm(x, g, b, eps):
    mu = jnp.mean(x, axis=-1, keepdims=True)
    var = jnp.mean((x - mu) ** 2, axis=-1, keepdims=True)
    return (x - mu) * jax.lax.rsqrt(var + eps) * g + b


def make_positional_encoding(seq_len, d_model):
    position = jnp.arange(seq_len, dtype=jnp.float32)[:, None]
    div_term = jnp.exp(jnp.arange(0, d_model, 2, dtype=jnp.float32)
                       * (-math.log(10000.0) / d_model))
    pe = jnp.zeros((seq_len, d_model), jnp.float32)
    pe = pe.at[:, 0::2].set(jnp.sin(position * div_term))
    pe = pe.at[:, 1::2].set(jnp.cos(position * div_term))
    return pe


# ----------------------------------------------------------------------------
# Fused kernel: embed (layer 0) + num_layers TransformerEncoderLayer blocks.
# ----------------------------------------------------------------------------

def encoder_stack_kernel(xr_ref, wf_ref, bf_ref, pe_ref, mb_ref,
                         wqkv_ref, bqkv_ref, wo_ref, bo_ref,
                         g1_ref, be1_ref, w1_ref, b1_ref, w2_ref, b2_ref,
                         g2_ref, be2_ref,
                         o_ref,
                         *, num_heads, eps, scale, bt, lp):
    layer = pl.program_id(1)
    R, D = o_ref.shape
    H = num_heads
    dh = D // H
    inv_sqrt_dh = 1.0 / math.sqrt(dh)

    # ---- layer 0: fused feat_embedding + sqrt(d_model) scale + positional
    # encoding, written straight into the resident output block (layer carry).
    @pl.when(layer == 0)
    def _():
        xb0 = xr_ref[...].astype(jnp.bfloat16)
        y = jnp.dot(xb0, wf_ref[...], preferred_element_type=jnp.float32)
        y = (y + bf_ref[...]) * scale
        y = y.reshape(bt, lp, D) + pe_ref[...][None]       # broadcast PE over batch
        o_ref[...] = y.reshape(R, D)

    x = o_ref[...]                                         # [R, D] f32 layer carry
    xb = x.astype(jnp.bfloat16)

    # ---- self-attention (all heads batched) --------------------------------
    qkv = jnp.dot(xb, wqkv_ref[0], preferred_element_type=jnp.float32) + bqkv_ref[0]
    qkv = qkv.reshape(bt, lp, 3 * D)                       # leading-dim split only

    # Head-major batched q/k/v: [H*bt, lp, dh] bf16 (leading-dim concats; no
    # per-head scratch, no masked partial stores).
    q = jnp.concatenate([qkv[:, :, h * dh:(h + 1) * dh] for h in range(H)],
                        axis=0).astype(jnp.bfloat16)
    k = jnp.concatenate([qkv[:, :, D + h * dh:D + (h + 1) * dh] for h in range(H)],
                        axis=0).astype(jnp.bfloat16)
    v = jnp.concatenate([qkv[:, :, 2 * D + h * dh:2 * D + (h + 1) * dh] for h in range(H)],
                        axis=0).astype(jnp.bfloat16)

    s = jnp.einsum('bqd,bkd->bqk', q, k,
                   preferred_element_type=jnp.float32)     # [H*bt, lp, lp]
    bias = jnp.concatenate([mb_ref[...]] * H, axis=0)      # [H*bt, 1, lp]
    s = s * inv_sqrt_dh + bias
    s = s - jnp.max(s, axis=-1, keepdims=True)
    p = jnp.exp(s)
    p = p * pl.reciprocal(jnp.sum(p, axis=-1, keepdims=True), approx=True)
    ctx = jnp.einsum('bqk,bkd->bqd', p.astype(jnp.bfloat16), v,
                     preferred_element_type=jnp.float32).astype(jnp.bfloat16)
    # Back to a lane-dense [R, D] bf16 slab for one K=D out-projection matmul.
    ctx2d = jnp.concatenate(
        [ctx[h * bt:(h + 1) * bt].reshape(bt * lp, dh) for h in range(H)], axis=-1)
    attn = jnp.dot(ctx2d, wo_ref[0], preferred_element_type=jnp.float32) + bo_ref[0]

    x1 = _layernorm(x + attn, g1_ref[0], be1_ref[0], eps)          # post-norm #1

    # ---- feed-forward (ReLU) ------------------------------------------------
    ff = jnp.dot(x1.astype(jnp.bfloat16), w1_ref[0],
                 preferred_element_type=jnp.float32) + b1_ref[0]
    ff = jnp.maximum(ff, 0.0)
    ff = jnp.dot(ff.astype(jnp.bfloat16), w2_ref[0],
                 preferred_element_type=jnp.float32) + b2_ref[0]

    o_ref[...] = _layernorm(x1 + ff, g2_ref[0], be2_ref[0], eps)   # post-norm #2


_W_ORDER = ("wqkv", "bqkv", "wo", "bo", "g1", "be1",
            "w1", "b1", "w2", "b2", "g2", "be2")


def run_encoder_stack(x_raw2d, w_feat, b_feat, pe, mask_bias, stacked,
                      *, num_heads, Bt, Lp, d_model, vmem_limit, eps=1e-5):
    R_total, Fin = x_raw2d.shape
    B = R_total // Lp
    nb = B // Bt
    n_layers = stacked["wqkv"].shape[0]
    block_rows = Bt * Lp
    w_args = [stacked[key] for key in _W_ORDER]

    in_specs = ([
        pl.BlockSpec((block_rows, Fin), lambda b, l: (b, 0)),       # raw features (resident per block)
        pl.BlockSpec(w_feat.shape, lambda b, l: (0, 0)),            # embed weight (resident)
        pl.BlockSpec(b_feat.shape, lambda b, l: (0, 0)),
        pl.BlockSpec(pe.shape, lambda b, l: (0, 0)),                # single (Lp, D) PE block
        pl.BlockSpec((Bt, 1, Lp), lambda b, l: (b, 0, 0)),          # key-padding bias
    ] + [pl.BlockSpec((1,) + w.shape[1:], lambda b, l: (l, 0, 0))   # streamed layer weights
         for w in w_args])

    return pl.pallas_call(
        functools.partial(encoder_stack_kernel, num_heads=num_heads, eps=eps,
                          scale=math.sqrt(d_model), bt=Bt, lp=Lp),
        out_shape=jax.ShapeDtypeStruct((R_total, d_model), jnp.float32),
        grid=(nb, n_layers),
        in_specs=in_specs,
        out_specs=pl.BlockSpec((block_rows, d_model), lambda b, l: (b, 0)),
        compiler_params=pltpu.CompilerParams(
            dimension_semantics=("parallel", "arbitrary"),
            vmem_limit_bytes=int(vmem_limit)),
    )(x_raw2d, w_feat, b_feat, pe, mask_bias, *w_args)


def image_transformer_encoder(inputs, lens, params, *, d_model, num_heads,
                              min_batch_blocks=1):
    """Eval-mode forward. inputs: [B, L, 2048] f32, lens: list[int].
    Set min_batch_blocks=2 on v7x so both TensorCores receive work."""
    B, L, Fin = inputs.shape
    max_len = max(lens)
    assert max_len == L
    assert d_model % num_heads == 0
    assert all(l >= 1 for l in lens)   # len==0 would fully mask a row (PyTorch -> NaN)

    # Pad the sequence axis to a multiple of 8 so in-kernel [Bt*Lp, X] <->
    # [Bt, Lp, X] re-views only touch leading dims; padded keys masked below.
    Lp = _round_up(L, 8)
    if Lp != L:
        inputs = jnp.pad(inputs, ((0, 0), (0, Lp - L), (0, 0)))

    lens_arr = jnp.asarray(lens, jnp.int32)
    pad = jnp.arange(Lp)[None, :] >= lens_arr[:, None]               # [B, Lp]
    mask_bias = jnp.where(pad, -1e9, 0.0).astype(jnp.float32).reshape(B, 1, Lp)

    dim_ff = params["layers"][0]["w1"].shape[1]

    vmem_cap = _detect_vmem_capacity_bytes()
    vmem_limit = max(32 * 1024 * 1024,
                     min(vmem_cap - 8 * 1024 * 1024, 120 * 1024 * 1024))
    Bt = _pick_batch_tile(B, Lp, d_model, dim_ff, num_heads, Fin,
                          vmem_budget=vmem_limit - 8 * 1024 * 1024,
                          min_blocks=min_batch_blocks)

    pe = make_positional_encoding(Lp, d_model)                       # [Lp, D]

    # bf16 copies of the matmul weights (halves weight DMA; f32 accumulate).
    w_feat_bf16 = params["w_feat"].astype(jnp.bfloat16)
    stacked = {key: jnp.stack([lyr[key] for lyr in params["layers"]], axis=0)
               for key in params["layers"][0]}
    for key in ("wqkv", "wo", "w1", "w2"):
        stacked[key] = stacked[key].astype(jnp.bfloat16)

    out2d = run_encoder_stack(inputs.reshape(B * Lp, Fin), w_feat_bf16,
                              params["b_feat"], pe, mask_bias, stacked,
                              num_heads=num_heads, Bt=Bt, Lp=Lp,
                              d_model=d_model, vmem_limit=vmem_limit)
    out = out2d.reshape(B, Lp, d_model)[:, :L]
    # module returns (img_output, img_output, img_output) when not training
    return out, out, out


# ----------------------------------------------------------------------------
# Deterministic parameter init (shapes from the module __init__)
# ----------------------------------------------------------------------------

def init_params(key, d_model, num_layers, dim_ff, feat_in=2048):
    def lin(k, fan_in, fan_out):
        k1, k2 = jax.random.split(k)
        bound = 1.0 / math.sqrt(fan_in)
        w = jax.random.uniform(k1, (fan_in, fan_out), jnp.float32, -bound, bound)
        b = jax.random.uniform(k2, (1, fan_out), jnp.float32, -bound, bound)
        return w, b

    keys = jax.random.split(key, 1 + num_layers)
    w_feat, b_feat = lin(keys[0], feat_in, d_model)
    layers = []
    for i in range(num_layers):
        k = jax.random.split(keys[1 + i], 4)
        wqkv, bqkv = lin(k[0], d_model, 3 * d_model)
        wo, bo = lin(k[1], d_model, d_model)
        w1, b1 = lin(k[2], d_model, dim_ff)
        w2, b2 = lin(k[3], dim_ff, d_model)
        layers.append(dict(
            wqkv=wqkv, bqkv=bqkv, wo=wo, bo=bo,
            w1=w1, b1=b1, w2=w2, b2=b2,
            g1=jnp.ones((1, d_model), jnp.float32), be1=jnp.zeros((1, d_model), jnp.float32),
            g2=jnp.ones((1, d_model), jnp.float32), be2=jnp.zeros((1, d_model), jnp.float32),
        ))
    return dict(w_feat=w_feat, b_feat=b_feat, layers=layers)


# ----------------------------------------------------------------------------
# Pure-JAX reference (same math) for correctness checks.
# ----------------------------------------------------------------------------

def reference(inputs, lens, params, d_model, num_heads, eps=1e-5,
              mirror_bf16=False):
    B, L, _ = inputs.shape
    lens_arr = jnp.asarray(lens, jnp.int32)
    pad = jnp.arange(L)[None, :] >= lens_arr[:, None]
    bias = jnp.where(pad, -1e9, 0.0)[:, None, None, :]               # [B,1,1,L]
    pe = make_positional_encoding(L, d_model)

    def cast(t):
        return t.astype(jnp.bfloat16) if mirror_bf16 else t

    def mm(a, b):
        return jnp.dot(cast(a), cast(b), preferred_element_type=jnp.float32)

    x = (mm(inputs, params["w_feat"]) + params["b_feat"]) * math.sqrt(d_model) + pe[None]
    dh = d_model // num_heads
    for lyr in params["layers"]:
        qkv = mm(x, lyr["wqkv"]) + lyr["bqkv"]
        q, k, v = jnp.split(qkv, 3, axis=-1)

        def heads(t):
            return t.reshape(B, L, num_heads, dh).transpose(0, 2, 1, 3)

        qh, kh, vh = heads(q), heads(k), heads(v)
        s = jnp.einsum("bhqd,bhkd->bhqk", cast(qh), cast(kh),
                       preferred_element_type=jnp.float32) / math.sqrt(dh) + bias
        p = jax.nn.softmax(s, axis=-1)
        a = jnp.einsum("bhqk,bhkd->bhqd", cast(p), cast(vh),
                       preferred_element_type=jnp.float32)
        a = a.transpose(0, 2, 1, 3).reshape(B, L, d_model)
        a = mm(a, lyr["wo"]) + lyr["bo"]
        x1 = _layernorm(x + a, lyr["g1"], lyr["be1"], eps)
        ff = jnp.maximum(mm(x1, lyr["w1"]) + lyr["b1"], 0.0)
        ff = mm(ff, lyr["w2"]) + lyr["b2"]
        x = _layernorm(x1 + ff, lyr["g2"], lyr["be2"], eps)
    return x


# TODO(synk): the `seperate_img`/VisualEmbedding per-image Python loop (numpy
# conversion, random 36-object masking) and the `training=True` summary/text
# branch are host-side, data-dependent glue with no kernel hot path; only the
# eval-mode feat_embedding -> pos-encoding -> Transformer-encoder path is
# implemented here.

if __name__ == "__main__":
    B, L, D, H, FFN, NUM_LAYERS = 2, 8, 32, 4, 64, 2
    FEAT_IN = 2048

    key = jax.random.PRNGKey(0)
    kx, kp = jax.random.split(key)
    inputs = jax.random.normal(kx, (B, L, FEAT_IN), jnp.float32)
    lens = [8, 5]

    params = init_params(kp, D, NUM_LAYERS, FFN, FEAT_IN)

    img_output, out2, out3 = image_transformer_encoder(
        inputs, lens, params, d_model=D, num_heads=H)
    jax.block_until_ready(img_output)

    assert img_output.shape == (B, L, D)
    assert not bool(jnp.isnan(img_output).any())

    # Tight check vs. a reference that mirrors the kernel's bf16 dot boundaries.
    ref_b = reference(inputs, lens, params, D, H, mirror_bf16=True)
    err_b = float(jnp.max(jnp.abs(img_output - ref_b)))
    assert bool(jnp.allclose(img_output, ref_b, atol=2e-2, rtol=2e-2)), err_b

    # Loose check vs. the pure-f32 reference (bounds bf16 / approx-recip noise,
    # still catches any semantic error such as a wrong mask or missing scale).
    ref_f = reference(inputs, lens, params, D, H, mirror_bf16=False)
    err_f = float(jnp.max(jnp.abs(img_output - ref_f)))
    assert bool(jnp.allclose(img_output, ref_f, atol=1.5e-1, rtol=1.5e-1)), err_f

    print("KERNEL_OK")
</pallas_src>

<mosaic_0001>
module attributes {stable_mosaic.version = 11 : i64} {
  func.func @encoder_stack_kernel(%arg0: i32, %arg1: i32, %arg2: memref<16x2048xf32, #tpu.memory_space<vmem>>, %arg3: memref<2048x32xbf16, #tpu.memory_space<vmem>>, %arg4: memref<1x32xf32, #tpu.memory_space<vmem>>, %arg5: memref<8x32xf32, #tpu.memory_space<vmem>>, %arg6: memref<2x1x8xf32, #tpu.memory_space<vmem>>, %arg7: memref<1x32x96xbf16, #tpu.memory_space<vmem>>, %arg8: memref<1x1x96xf32, #tpu.memory_space<vmem>>, %arg9: memref<1x32x32xbf16, #tpu.memory_space<vmem>>, %arg10: memref<1x1x32xf32, #tpu.memory_space<vmem>>, %arg11: memref<1x1x32xf32, #tpu.memory_space<vmem>>, %arg12: memref<1x1x32xf32, #tpu.memory_space<vmem>>, %arg13: memref<1x32x64xbf16, #tpu.memory_space<vmem>>, %arg14: memref<1x1x64xf32, #tpu.memory_space<vmem>>, %arg15: memref<1x64x32xbf16, #tpu.memory_space<vmem>>, %arg16: memref<1x1x32xf32, #tpu.memory_space<vmem>>, %arg17: memref<1x1x32xf32, #tpu.memory_space<vmem>>, %arg18: memref<1x1x32xf32, #tpu.memory_space<vmem>>, %arg19: memref<16x32xf32, #tpu.memory_space<vmem>>) attributes {dimension_semantics = [#tpu.dimension_semantics<parallel>, #tpu.dimension_semantics<arbitrary>], iteration_bounds = array<i64: 1, 2>, scalar_prefetch = 0 : i64, scratch_operands = 0 : i64, tpu.core_type = #tpu.core_type<tc>, window_params = [{transform_indices = @transform_0, window_bounds = array<i64: 16, 2048>}, {pipeline_mode = #tpu.pipeline_mode<synchronous>, transform_indices = @transform_1, window_bounds = array<i64: 2048, 32>}, {pipeline_mode = #tpu.pipeline_mode<synchronous>, transform_indices = @transform_2, window_bounds = array<i64: 1, 32>}, {pipeline_mode = #tpu.pipeline_mode<synchronous>, transform_indices = @transform_3, window_bounds = array<i64: 8, 32>}, {transform_indices = @transform_4, window_bounds = array<i64: 2, 1, 8>}, {transform_indices = @transform_5, window_bounds = array<i64: 1, 32, 96>}, {transform_indices = @transform_6, window_bounds = array<i64: 1, 1, 96>}, {transform_indices = @transform_7, window_bounds = array<i64: 1, 32, 32>}, {transform_indices = @transform_8, window_bounds = array<i64: 1, 1, 32>}, {transform_indices = @transform_9, window_bounds = array<i64: 1, 1, 32>}, {transform_indices = @transform_10, window_bounds = array<i64: 1, 1, 32>}, {transform_indices = @transform_11, window_bounds = array<i64: 1, 32, 64>}, {transform_indices = @transform_12, window_bounds = array<i64: 1, 1, 64>}, {transform_indices = @transform_13, window_bounds = array<i64: 1, 64, 32>}, {transform_indices = @transform_14, window_bounds = array<i64: 1, 1, 32>}, {transform_indices = @transform_15, window_bounds = array<i64: 1, 1, 32>}, {transform_indices = @transform_16, window_bounds = array<i64: 1, 1, 32>}, {transform_indices = @transform_17, window_bounds = array<i64: 16, 32>}]} {
    %c0_i32 = arith.constant 0 : i32
    %0 = arith.cmpi eq, %arg1, %c0_i32 : i32
    %1 = arith.extui %0 : i1 to i32
    %c0_i32_0 = arith.constant 0 : i32
    %2 = arith.cmpi ne, %1, %c0_i32_0 : i32
    scf.if %2 {
      %c0_62 = arith.constant 0 : index
      %c0_63 = arith.constant 0 : index
      %140 = vector.load %arg2[%c0_62, %c0_63] : memref<16x2048xf32, #tpu.memory_space<vmem>>, vector<16x2048xf32>
      %141 = arith.truncf %140 : vector<16x2048xf32> to vector<16x2048xbf16>
      %c0_64 = arith.constant 0 : index
      %c0_65 = arith.constant 0 : index
      %142 = vector.load %arg3[%c0_64, %c0_65] : memref<2048x32xbf16, #tpu.memory_space<vmem>>, vector<2048x32xbf16>
      %cst_66 = arith.constant dense<0.000000e+00> : vector<16x32xf32>
      %143 = tpu.matmul %141, %142, %cst_66 {dimension_numbers = #tpu.dot_dimension_numbers<[1], [0], [0], [1], [0, 0, 1, 1], [], []>} : vector<16x2048xbf16>, vector<2048x32xbf16>, vector<16x32xf32> -> vector<16x32xf32>
      %c0_67 = arith.constant 0 : index
      %c0_68 = arith.constant 0 : index
      %144 = vector.load %arg4[%c0_67, %c0_68] : memref<1x32xf32, #tpu.memory_space<vmem>>, vector<1x32xf32>
      %145 = vector.broadcast %144 : vector<1x32xf32> to vector<16x32xf32>
      %146 = arith.addf %143, %145 : vector<16x32xf32>
      %cst_69 = arith.constant 5.65685415 : f32
      %147 = vector.broadcast %cst_69 : f32 to vector<16x32xf32>
      %148 = arith.mulf %146, %147 : vector<16x32xf32>
      %149 = vector.shape_cast %148 : vector<16x32xf32> to vector<2x8x32xf32>
      %c0_70 = arith.constant 0 : index
      %c0_71 = arith.constant 0 : index
      %150 = vector.load %arg5[%c0_70, %c0_71] : memref<8x32xf32, #tpu.memory_space<vmem>>, vector<8x32xf32>
      %151 = vector.shape_cast %150 : vector<8x32xf32> to vector<1x8x32xf32>
      %152 = vector.broadcast %151 : vector<1x8x32xf32> to vector<2x8x32xf32>
      %153 = arith.addf %149, %152 : vector<2x8x32xf32>
      %154 = vector.shape_cast %153 : vector<2x8x32xf32> to vector<16x32xf32>
      %c0_72 = arith.constant 0 : index
      %c0_73 = arith.constant 0 : index
      %155 = vector.load %arg19[%c0_72, %c0_73] : memref<16x32xf32, #tpu.memory_space<vmem>>, vector<16x32xf32>
      tpu.vector_store %arg19[%c0_72, %c0_73], %154 {strides = array<i32>} : memref<16x32xf32, #tpu.memory_space<vmem>>, vector<16x32xf32>,
    } else {
    }
    %c0 = arith.constant 0 : index
    %c0_1 = arith.constant 0 : index
    %3 = vector.load %arg19[%c0, %c0_1] : memref<16x32xf32, #tpu.memory_space<vmem>>, vector<16x32xf32>
    %4 = arith.truncf %3 : vector<16x32xf32> to vector<16x32xbf16>
    %c0_2 = arith.constant 0 : index
    %c0_3 = arith.constant 0 : index
    %c0_4 = arith.constant 0 : index
    %5 = vector.load %arg7[%c0_2, %c0_3, %c0_4] : memref<1x32x96xbf16, #tpu.memory_space<vmem>>, vector<1x32x96xbf16>
    %6 = vector.shape_cast %5 : vector<1x32x96xbf16> to vector<32x96xbf16>
    %cst = arith.constant dense<0.000000e+00> : vector<16x96xf32>
    %7 = tpu.matmul %4, %6, %cst {dimension_numbers = #tpu.dot_dimension_numbers<[1], [0], [0], [1], [0, 0, 1, 1], [], []>} : vector<16x32xbf16>, vector<32x96xbf16>, vector<16x96xf32> -> vector<16x96xf32>
    %c0_5 = arith.constant 0 : index
    %c0_6 = arith.constant 0 : index
    %c0_7 = arith.constant 0 : index
    %8 = vector.load %arg8[%c0_5, %c0_6, %c0_7] : memref<1x1x96xf32, #tpu.memory_space<vmem>>, vector<1x1x96xf32>
    %9 = vector.shape_cast %8 : vector<1x1x96xf32> to vector<1x96xf32>
    %10 = vector.broadcast %9 : vector<1x96xf32> to vector<16x96xf32>
    %11 = arith.addf %7, %10 : vector<16x96xf32>
    %12 = vector.shape_cast %11 : vector<16x96xf32> to vector<2x8x96xf32>
    %13 = vector.extract_strided_slice %12 {offsets = [0, 0, 0], sizes = [2, 8, 8], strides = [1, 1, 1]} : vector<2x8x96xf32> to vector<2x8x8xf32>
    %14 = vector.extract_strided_slice %12 {offsets = [0, 0, 8], sizes = [2, 8, 8], strides = [1, 1, 1]} : vector<2x8x96xf32> to vector<2x8x8xf32>
    %15 = vector.extract_strided_slice %12 {offsets = [0, 0, 16], sizes = [2, 8, 8], strides = [1, 1, 1]} : vector<2x8x96xf32> to vector<2x8x8xf32>
    %16 = vector.extract_strided_slice %12 {offsets = [0, 0, 24], sizes = [2, 8, 8], strides = [1, 1, 1]} : vector<2x8x96xf32> to vector<2x8x8xf32>
    %17 = tpu.concatenate %13, %14, %15, %16 in 0 : vector<2x8x8xf32>, vector<2x8x8xf32>, vector<2x8x8xf32>, vector<2x8x8xf32> -> vector<8x8x8xf32>
    %18 = arith.truncf %17 : vector<8x8x8xf32> to vector<8x8x8xbf16>
    %19 = vector.extract_strided_slice %12 {offsets = [0, 0, 32], sizes = [2, 8, 8], strides = [1, 1, 1]} : vector<2x8x96xf32> to vector<2x8x8xf32>
    %20 = vector.extract_strided_slice %12 {offsets = [0, 0, 40], sizes = [2, 8, 8], strides = [1, 1, 1]} : vector<2x8x96xf32> to vector<2x8x8xf32>
    %21 = vector.extract_strided_slice %12 {offsets = [0, 0, 48], sizes = [2, 8, 8], strides = [1, 1, 1]} : vector<2x8x96xf32> to vector<2x8x8xf32>
    %22 = vector.extract_strided_slice %12 {offsets = [0, 0, 56], sizes = [2, 8, 8], strides = [1, 1, 1]} : vector<2x8x96xf32> to vector<2x8x8xf32>
    %23 = tpu.concatenate %19, %20, %21, %22 in 0 : vector<2x8x8xf32>, vector<2x8x8xf32>, vector<2x8x8xf32>, vector<2x8x8xf32> -> vector<8x8x8xf32>
    %24 = arith.truncf %23 : vector<8x8x8xf32> to vector<8x8x8xbf16>
    %25 = vector.extract_strided_slice %12 {offsets = [0, 0, 64], sizes = [2, 8, 8], strides = [1, 1, 1]} : vector<2x8x96xf32> to vector<2x8x8xf32>
    %26 = vector.extract_strided_slice %12 {offsets = [0, 0, 72], sizes = [2, 8, 8], strides = [1, 1, 1]} : vector<2x8x96xf32> to vector<2x8x8xf32>
    %27 = vector.extract_strided_slice %12 {offsets = [0, 0, 80], sizes = [2, 8, 8], strides = [1, 1, 1]} : vector<2x8x96xf32> to vector<2x8x8xf32>
    %28 = vector.extract_strided_slice %12 {offsets = [0, 0, 88], sizes = [2, 8, 8], strides = [1, 1, 1]} : vector<2x8x96xf32> to vector<2x8x8xf32>
    %29 = tpu.concatenate %25, %26, %27, %28 in 0 : vector<2x8x8xf32>, vector<2x8x8xf32>, vector<2x8x8xf32>, vector<2x8x8xf32> -> vector<8x8x8xf32>
    %30 = arith.truncf %29 : vector<8x8x8xf32> to vector<8x8x8xbf16>
    "tpu.trace_start"() <{level = 10 : i32, message = "bqd,bkd->bqk"}> : () -> ()
    %cst_8 = arith.constant dense<0.000000e+00> : vector<8x8x8xf32>
    %31 = tpu.matmul %18, %24, %cst_8 {dimension_numbers = #tpu.dot_dimension_numbers<[2], [2], [1], [1], [0, 0, 0, 1, 1, 1], [0], [0]>} : vector<8x8x8xbf16>, vector<8x8x8xbf16>, vector<8x8x8xf32> -> vector<8x8x8xf32>
    "tpu.trace_stop"() : () -> ()
    %c0_9 = arith.constant 0 : index
    %c0_10 = arith.constant 0 : index
    %c0_11 = arith.constant 0 : index
    %32 = vector.load %arg6[%c0_9, %c0_10, %c0_11] : memref<2x1x8xf32, #tpu.memory_space<vmem>>, vector<2x1x8xf32>
    %33 = tpu.concatenate %32, %32, %32, %32 in 0 : vector<2x1x8xf32>, vector<2x1x8xf32>, vector<2x1x8xf32>, vector<2x1x8xf32> -> vector<8x1x8xf32>
    %cst_12 = arith.constant 0.353553385 : f32
    %34 = vector.broadcast %cst_12 : f32 to vector<8x8x8xf32>
    %35 = arith.mulf %31, %34 : vector<8x8x8xf32>
    %36 = vector.broadcast %33 : vector<8x1x8xf32> to vector<8x8x8xf32>
    %37 = arith.addf %35, %36 : vector<8x8x8xf32>
    %cst_13 = arith.constant dense<0xFF800000> : vector<8x8xf32>
    %38 = vector.multi_reduction <maximumf>, %37, %cst_13 [2] : vector<8x8x8xf32> to vector<8x8xf32>
    %39 = vector.shape_cast %38 : vector<8x8xf32> to vector<8x8x1xf32>
    %40 = vector.broadcast %39 : vector<8x8x1xf32> to vector<8x8x8xf32>
    %41 = arith.subf %37, %40 : vector<8x8x8xf32>
    %42 = math.exp %41 : vector<8x8x8xf32>
    %cst_14 = arith.constant dense<0.000000e+00> : vector<8x8xf32>
    %43 = vector.multi_reduction <add>, %42, %cst_14 [2] : vector<8x8x8xf32> to vector<8x8xf32>
    %44 = vector.shape_cast %43 : vector<8x8xf32> to vector<8x8x1xf32>
    %45 = tpu.reciprocal %44 {approx = true} : vector<8x8x1xf32> -> vector<8x8x1xf32>
    %46 = vector.broadcast %45 : vector<8x8x1xf32> to vector<8x8x8xf32>
    %47 = arith.mulf %42, %46 : vector<8x8x8xf32>
    %48 = arith.truncf %47 : vector<8x8x8xf32> to vector<8x8x8xbf16>
    "tpu.trace_start"() <{level = 10 : i32, message = "bqk,bkd->bqd"}> : () -> ()
    %cst_15 = arith.constant dense<0.000000e+00> : vector<8x8x8xf32>
    %49 = tpu.matmul %48, %30, %cst_15 {dimension_numbers = #tpu.dot_dimension_numbers<[2], [1], [1], [2], [0, 0, 0, 1, 1, 2], [0], [0]>} : vector<8x8x8xbf16>, vector<8x8x8xbf16>, vector<8x8x8xf32> -> vector<8x8x8xf32>
    "tpu.trace_stop"() : () -> ()
    %50 = arith.truncf %49 : vector<8x8x8xf32> to vector<8x8x8xbf16>
    %51 = vector.extract_strided_slice %50 {offsets = [0, 0, 0], sizes = [2, 8, 8], strides = [1, 1, 1]} : vector<8x8x8xbf16> to vector<2x8x8xbf16>
    %52 = vector.shape_cast %51 : vector<2x8x8xbf16> to vector<16x8xbf16>
    %53 = vector.extract_strided_slice %50 {offsets = [2, 0, 0], sizes = [2, 8, 8], strides = [1, 1, 1]} : vector<8x8x8xbf16> to vector<2x8x8xbf16>
    %54 = vector.shape_cast %53 : vector<2x8x8xbf16> to vector<16x8xbf16>
    %55 = vector.extract_strided_slice %50 {offsets = [4, 0, 0], sizes = [2, 8, 8], strides = [1, 1, 1]} : vector<8x8x8xbf16> to vector<2x8x8xbf16>
    %56 = vector.shape_cast %55 : vector<2x8x8xbf16> to vector<16x8xbf16>
    %57 = vector.extract_strided_slice %50 {offsets = [6, 0, 0], sizes = [2, 8, 8], strides = [1, 1, 1]} : vector<8x8x8xbf16> to vector<2x8x8xbf16>
    %58 = vector.shape_cast %57 : vector<2x8x8xbf16> to vector<16x8xbf16>
    %59 = tpu.concatenate %52, %54, %56, %58 in 1 : vector<16x8xbf16>, vector<16x8xbf16>, vector<16x8xbf16>, vector<16x8xbf16> -> vector<16x32xbf16>
    %c0_16 = arith.constant 0 : index
    %c0_17 = arith.constant 0 : index
    %c0_18 = arith.constant 0 : index
    %60 = vector.load %arg9[%c0_16, %c0_17, %c0_18] : memref<1x32x32xbf16, #tpu.memory_space<vmem>>, vector<1x32x32xbf16>
    %61 = vector.shape_cast %60 : vector<1x32x32xbf16> to vector<32x32xbf16>
    %cst_19 = arith.constant dense<0.000000e+00> : vector<16x32xf32>
    %62 = tpu.matmul %59, %61, %cst_19 {dimension_numbers = #tpu.dot_dimension_numbers<[1], [0], [0], [1], [0, 0, 1, 1], [], []>} : vector<16x32xbf16>, vector<32x32xbf16>, vector<16x32xf32> -> vector<16x32xf32>
    %c0_20 = arith.constant 0 : index
    %c0_21 = arith.constant 0 : index
    %c0_22 = arith.constant 0 : index
    %63 = vector.load %arg10[%c0_20, %c0_21, %c0_22] : memref<1x1x32xf32, #tpu.memory_space<vmem>>, vector<1x1x32xf32>
    %64 = vector.shape_cast %63 : vector<1x1x32xf32> to vector<1x32xf32>
    %65 = vector.broadcast %64 : vector<1x32xf32> to vector<16x32xf32>
    %66 = arith.addf %62, %65 : vector<16x32xf32>
    %67 = arith.addf %3, %66 : vector<16x32xf32>
    %c0_23 = arith.constant 0 : index
    %c0_24 = arith.constant 0 : index
    %c0_25 = arith.constant 0 : index
    %68 = vector.load %arg11[%c0_23, %c0_24, %c0_25] : memref<1x1x32xf32, #tpu.memory_space<vmem>>, vector<1x1x32xf32>
    %69 = vector.shape_cast %68 : vector<1x1x32xf32> to vector<1x32xf32>
    %c0_26 = arith.constant 0 : index
    %c0_27 = arith.constant 0 : index
    %c0_28 = arith.constant 0 : index
    %70 = vector.load %arg12[%c0_26, %c0_27, %c0_28] : memref<1x1x32xf32, #tpu.memory_space<vmem>>, vector<1x1x32xf32>
    %71 = vector.shape_cast %70 : vector<1x1x32xf32> to vector<1x32xf32>
    %cst_29 = arith.constant dense<0.000000e+00> : vector<16xf32>
    %72 = vector.multi_reduction <add>, %67, %cst_29 [1] : vector<16x32xf32> to vector<16xf32>
    %73 = vector.shape_cast %72 : vector<16xf32> to vector<16x1xf32>
    %cst_30 = arith.constant 3.200000e+01 : f32
    %74 = vector.broadcast %cst_30 : f32 to vector<16x1xf32>
    %75 = arith.divf %73, %74 : vector<16x1xf32>
    %76 = vector.broadcast %75 : vector<16x1xf32> to vector<16x32xf32>
    %77 = arith.subf %67, %76 : vector<16x32xf32>
    %78 = arith.mulf %77, %77 : vector<16x32xf32>
    %cst_31 = arith.constant dense<0.000000e+00> : vector<16xf32>
    %79 = vector.multi_reduction <add>, %78, %cst_31 [1] : vector<16x32xf32> to vector<16xf32>
    %80 = vector.shape_cast %79 : vector<16xf32> to vector<16x1xf32>
    %cst_32 = arith.constant 3.200000e+01 : f32
    %81 = vector.broadcast %cst_32 : f32 to vector<16x1xf32>
    %82 = arith.divf %80, %81 : vector<16x1xf32>
    %83 = vector.broadcast %75 : vector<16x1xf32> to vector<16x32xf32>
    %84 = arith.subf %67, %83 : vector<16x32xf32>
    %cst_33 = arith.constant 9.99999974E-6 : f32
    %85 = vector.broadcast %cst_33 : f32 to vector<16x1xf32>
    %86 = arith.addf %82, %85 : vector<16x1xf32>
    %87 = math.rsqrt %86 : vector<16x1xf32>
    %88 = vector.broadcast %87 : vector<16x1xf32> to vector<16x32xf32>
    %89 = arith.mulf %84, %88 : vector<16x32xf32>
    %90 = vector.broadcast %69 : vector<1x32xf32> to vector<16x32xf32>
    %91 = arith.mulf %89, %90 : vector<16x32xf32>
    %92 = vector.broadcast %71 : vector<1x32xf32> to vector<16x32xf32>
    %93 = arith.addf %91, %92 : vector<16x32xf32>
    %94 = arith.truncf %93 : vector<16x32xf32> to vector<16x32xbf16>
    %c0_34 = arith.constant 0 : index
    %c0_35 = arith.constant 0 : index
    %c0_36 = arith.constant 0 : index
    %95 = vector.load %arg13[%c0_34, %c0_35, %c0_36] : memref<1x32x64xbf16, #tpu.memory_space<vmem>>, vector<1x32x64xbf16>
    %96 = vector.shape_cast %95 : vector<1x32x64xbf16> to vector<32x64xbf16>
    %cst_37 = arith.constant dense<0.000000e+00> : vector<16x64xf32>
    %97 = tpu.matmul %94, %96, %cst_37 {dimension_numbers = #tpu.dot_dimension_numbers<[1], [0], [0], [1], [0, 0, 1, 1], [], []>} : vector<16x32xbf16>, vector<32x64xbf16>, vector<16x64xf32> -> vector<16x64xf32>
    %c0_38 = arith.constant 0 : index
    %c0_39 = arith.constant 0 : index
    %c0_40 = arith.constant 0 : index
    %98 = vector.load %arg14[%c0_38, %c0_39, %c0_40] : memref<1x1x64xf32, #tpu.memory_space<vmem>>, vector<1x1x64xf32>
    %99 = vector.shape_cast %98 : vector<1x1x64xf32> to vector<1x64xf32>
    %100 = vector.broadcast %99 : vector<1x64xf32> to vector<16x64xf32>
    %101 = arith.addf %97, %100 : vector<16x64xf32>
    %cst_41 = arith.constant 0.000000e+00 : f32
    %102 = vector.broadcast %cst_41 : f32 to vector<16x64xf32>
    %103 = arith.maximumf %101, %102 : vector<16x64xf32>
    %104 = arith.truncf %103 : vector<16x64xf32> to vector<16x64xbf16>
    %c0_42 = arith.constant 0 : index
    %c0_43 = arith.constant 0 : index
    %c0_44 = arith.constant 0 : index
    %105 = vector.load %arg15[%c0_42, %c0_43, %c0_44] : memref<1x64x32xbf16, #tpu.memory_space<vmem>>, vector<1x64x32xbf16>
    %106 = vector.shape_cast %105 : vector<1x64x32xbf16> to vector<64x32xbf16>
    %cst_45 = arith.constant dense<0.000000e+00> : vector<16x32xf32>
    %107 = tpu.matmul %104, %106, %cst_45 {dimension_numbers = #tpu.dot_dimension_numbers<[1], [0], [0], [1], [0, 0, 1, 1], [], []>} : vector<16x64xbf16>, vector<64x32xbf16>, vector<16x32xf32> -> vector<16x32xf32>
    %c0_46 = arith.constant 0 : index
    %c0_47 = arith.constant 0 : index
    %c0_48 = arith.constant 0 : index
    %108 = vector.load %arg16[%c0_46, %c0_47, %c0_48] : memref<1x1x32xf32, #tpu.memory_space<vmem>>, vector<1x1x32xf32>
    %109 = vector.shape_cast %108 : vector<1x1x32xf32> to vector<1x32xf32>
    %110 = vector.broadcast %109 : vector<1x32xf32> to vector<16x32xf32>
    %111 = arith.addf %107, %110 : vector<16x32xf32>
    %112 = arith.addf %93, %111 : vector<16x32xf32>
    %c0_49 = arith.constant 0 : index
    %c0_50 = arith.constant 0 : index
    %c0_51 = arith.constant 0 : index
    %113 = vector.load %arg17[%c0_49, %c0_50, %c0_51] : memref<1x1x32xf32, #tpu.memory_space<vmem>>, vector<1x1x32xf32>
    %114 = vector.shape_cast %113 : vector<1x1x32xf32> to vector<1x32xf32>
    %c0_52 = arith.constant 0 : index
    %c0_53 = arith.constant 0 : index
    %c0_54 = arith.constant 0 : index
    %115 = vector.load %arg18[%c0_52, %c0_53, %c0_54] : memref<1x1x32xf32, #tpu.memory_space<vmem>>, vector<1x1x32xf32>
    %116 = vector.shape_cast %115 : vector<1x1x32xf32> to vector<1x32xf32>
    %cst_55 = arith.constant dense<0.000000e+00> : vector<16xf32>
    %117 = vector.multi_reduction <add>, %112, %cst_55 [1] : vector<16x32xf32> to vector<16xf32>
    %118 = vector.shape_cast %117 : vector<16xf32> to vector<16x1xf32>
    %cst_56 = arith.constant 3.200000e+01 : f32
    %119 = vector.broadcast %cst_56 : f32 to vector<16x1xf32>
    %120 = arith.divf %118, %119 : vector<16x1xf32>
    %121 = vector.broadcast %120 : vector<16x1xf32> to vector<16x32xf32>
    %122 = arith.subf %112, %121 : vector<16x32xf32>
    %123 = arith.mulf %122, %122 : vector<16x32xf32>
    %cst_57 = arith.constant dense<0.000000e+00> : vector<16xf32>
    %124 = vector.multi_reduction <add>, %123, %cst_57 [1] : vector<16x32xf32> to vector<16xf32>
    %125 = vector.shape_cast %124 : vector<16xf32> to vector<16x1xf32>
    %cst_58 = arith.constant 3.200000e+01 : f32
    %126 = vector.broadcast %cst_58 : f32 to vector<16x1xf32>
    %127 = arith.divf %125, %126 : vector<16x1xf32>
    %128 = vector.broadcast %120 : vector<16x1xf32> to vector<16x32xf32>
    %129 = arith.subf %112, %128 : vector<16x32xf32>
    %cst_59 = arith.constant 9.99999974E-6 : f32
    %130 = vector.broadcast %cst_59 : f32 to vector<16x1xf32>
    %131 = arith.addf %127, %130 : vector<16x1xf32>
    %132 = math.rsqrt %131 : vector<16x1xf32>
    %133 = vector.broadcast %132 : vector<16x1xf32> to vector<16x32xf32>
    %134 = arith.mulf %129, %133 : vector<16x32xf32>
    %135 = vector.broadcast %114 : vector<1x32xf32> to vector<16x32xf32>
    %136 = arith.mulf %134, %135 : vector<16x32xf32>
    %137 = vector.broadcast %116 : vector<1x32xf32> to vector<16x32xf32>
    %138 = arith.addf %136, %137 : vector<16x32xf32>
    %c0_60 = arith.constant 0 : index
    %c0_61 = arith.constant 0 : index
    %139 = vector.load %arg19[%c0_60, %c0_61] : memref<16x32xf32, #tpu.memory_space<vmem>>, vector<16x32xf32>
    tpu.vector_store %arg19[%c0_60, %c0_61], %138 {strides = array<i32>} : memref<16x32xf32, #tpu.memory_space<vmem>>, vector<16x32xf32>,
    return
  }
  func.func @transform_0(%arg0: i32, %arg1: i32) -> (i32, i32) {
    %c0_i32 = arith.constant 0 : i32
    %c0_i32_0 = arith.constant 0 : i32
    return %arg0, %c0_i32 : i32, i32
  }
  func.func @transform_1(%arg0: i32, %arg1: i32) -> (i32, i32) {
    %c0_i32 = arith.constant 0 : i32
    %c0_i32_0 = arith.constant 0 : i32
    %c0_i32_1 = arith.constant 0 : i32
    return %c0_i32, %c0_i32_0 : i32, i32
  }
  func.func @transform_2(%arg0: i32, %arg1: i32) -> (i32, i32) {
    %c0_i32 = arith.constant 0 : i32
    %c0_i32_0 = arith.constant 0 : i32
    %c0_i32_1 = arith.constant 0 : i32
    return %c0_i32, %c0_i32_0 : i32, i32
  }
  func.func @transform_3(%arg0: i32, %arg1: i32) -> (i32, i32) {
    %c0_i32 = arith.constant 0 : i32
    %c0_i32_0 = arith.constant 0 : i32
    %c0_i32_1 = arith.constant 0 : i32
    return %c0_i32, %c0_i32_0 : i32, i32
  }
  func.func @transform_4(%arg0: i32, %arg1: i32) -> (i32, i32, i32) {
    %c0_i32 = arith.constant 0 : i32
    %c0_i32_0 = arith.constant 0 : i32
    %c0_i32_1 = arith.constant 0 : i32
    return %arg0, %c0_i32, %c0_i32_0 : i32, i32, i32
  }
  func.func @transform_5(%arg0: i32, %arg1: i32) -> (i32, i32, i32) {
    %c0_i32 = arith.constant 0 : i32
    %c0_i32_0 = arith.constant 0 : i32
    %c0_i32_1 = arith.constant 0 : i32
    return %arg1, %c0_i32, %c0_i32_0 : i32, i32, i32
  }
  func.func @transform_6(%arg0: i32, %arg1: i32) -> (i32, i32, i32) {
    %c0_i32 = arith.constant 0 : i32
    %c0_i32_0 = arith.constant 0 : i32
    %c0_i32_1 = arith.constant 0 : i32
    return %arg1, %c0_i32, %c0_i32_0 : i32, i32, i32
  }
  func.func @transform_7(%arg0: i32, %arg1: i32) -> (i32, i32, i32) {
    %c0_i32 = arith.constant 0 : i32
    %c0_i32_0 = arith.constant 0 : i32
    %c0_i32_1 = arith.constant 0 : i32
    return %arg1, %c0_i32, %c0_i32_0 : i32, i32, i32
  }
  func.func @transform_8(%arg0: i32, %arg1: i32) -> (i32, i32, i32) {
    %c0_i32 = arith.constant 0 : i32
    %c0_i32_0 = arith.constant 0 : i32
    %c0_i32_1 = arith.constant 0 : i32
    return %arg1, %c0_i32, %c0_i32_0 : i32, i32, i32
  }
  func.func @transform_9(%arg0: i32, %arg1: i32) -> (i32, i32, i32) {
    %c0_i32 = arith.constant 0 : i32
    %c0_i32_0 = arith.constant 0 : i32
    %c0_i32_1 = arith.constant 0 : i32
    return %arg1, %c0_i32, %c0_i32_0 : i32, i32, i32
  }
  func.func @transform_10(%arg0: i32, %arg1: i32) -> (i32, i32, i32) {
    %c0_i32 = arith.constant 0 : i32
    %c0_i32_0 = arith.constant 0 : i32
    %c0_i32_1 = arith.constant 0 : i32
    return %arg1, %c0_i32, %c0_i32_0 : i32, i32, i32
  }
  func.func @transform_11(%arg0: i32, %arg1: i32) -> (i32, i32, i32) {
    %c0_i32 = arith.constant 0 : i32
    %c0_i32_0 = arith.constant 0 : i32
    %c0_i32_1 = arith.constant 0 : i32
    return %arg1, %c0_i32, %c0_i32_0 : i32, i32, i32
  }
  func.func @transform_12(%arg0: i32, %arg1: i32) -> (i32, i32, i32) {
    %c0_i32 = arith.constant 0 : i32
    %c0_i32_0 = arith.constant 0 : i32
    %c0_i32_1 = arith.constant 0 : i32
    return %arg1, %c0_i32, %c0_i32_0 : i32, i32, i32
  }
  func.func @transform_13(%arg0: i32, %arg1: i32) -> (i32, i32, i32) {
    %c0_i32 = arith.constant 0 : i32
    %c0_i32_0 = arith.constant 0 : i32
    %c0_i32_1 = arith.constant 0 : i32
    return %arg1, %c0_i32, %c0_i32_0 : i32, i32, i32
  }
  func.func @transform_14(%arg0: i32, %arg1: i32) -> (i32, i32, i32) {
    %c0_i32 = arith.constant 0 : i32
    %c0_i32_0 = arith.constant 0 : i32
    %c0_i32_1 = arith.constant 0 : i32
    return %arg1, %c0_i32, %c0_i32_0 : i32, i32, i32
  }
  func.func @transform_15(%arg0: i32, %arg1: i32) -> (i32, i32, i32) {
    %c0_i32 = arith.constant 0 : i32
    %c0_i32_0 = arith.constant 0 : i32
    %c0_i32_1 = arith.constant 0 : i32
    return %arg1, %c0_i32, %c0_i32_0 : i32, i32, i32
  }
  func.func @transform_16(%arg0: i32, %arg1: i32) -> (i32, i32, i32) {
    %c0_i32 = arith.constant 0 : i32
    %c0_i32_0 = arith.constant 0 : i32
    %c0_i32_1 = arith.constant 0 : i32
    return %arg1, %c0_i32, %c0_i32_0 : i32, i32, i32
  }
  func.func @transform_17(%arg0: i32, %arg1: i32) -> (i32, i32) {
    %c0_i32 = arith.constant 0 : i32
    %c0_i32_0 = arith.constant 0 : i32
    return %arg0, %c0_i32 : i32, i32
  }
}

</mosaic_0001>

<bundles_post_ra>
// kernel: tpu_custom_call.1
= control target key start
LH: loop header
LB: loop body
LE: loop exit
PB: predicated region body
PF: predicated region fallthrough
CT: control target
= control target key end

     0   :  { %s5554_s0 = inlined_call_operand.vmem [shape: f32[16,2048], index: 0, kind: input, shape index: {}]   ;;  %s5555_s1 = inlined_call_operand.vmem [shape: bf16[2048,32], index: 1, kind: input, shape index: {}]   ;;  %s5556_s2 = inlined_call_operand.vmem [shape: f32[1,32], index: 2, kind: input, shape index: {}]   ;;  %s5557_s3 = inlined_call_operand.vmem [shape: f32[8,32], index: 3, kind: input, shape index: {}]   ;;  %s5558_s4 = inlined_call_operand.vmem [shape: f32[2,1,8], index: 4, kind: input, shape index: {}]   ;;  %s5559_s5 = inlined_call_operand.vmem [shape: bf16[2,32,96], index: 5, kind: input, shape index: {}]   ;;  %s5560_s6 = inlined_call_operand.vmem [shape: f32[2,1,96], index: 6, kind: input, shape index: {}]   ;;  %s5561_s7 = inlined_call_operand.vmem [shape: bf16[2,32,32], index: 7, kind: input, shape index: {}]   ;;  %s5562_s8 = inlined_call_operand.vmem [shape: f32[2,1,32], index: 8, kind: input, shape index: {}]   ;;  %s5563_s9 = inlined_call_operand.vmem [shape: f32[2,1,32], index: 9, kind: input, shape index: {}]   ;;  %s5564_s10 = inlined_call_operand.vmem [shape: f32[2,1,32], index: 10, kind: input, shape index: {}]   ;;  %s5565_s11 = inlined_call_operand.vmem [shape: bf16[2,32,64], index: 11, kind: input, shape index: {}]   ;;  %s5566_s12 = inlined_call_operand.vmem [shape: f32[2,1,64], index: 12, kind: input, shape index: {}]   ;;  %s5567_s13 = inlined_call_operand.vmem [shape: bf16[2,64,32], index: 13, kind: input, shape index: {}]   ;;  %s5568_s14 = inlined_call_operand.vmem [shape: f32[2,1,32], index: 14, kind: input, shape index: {}]   ;;  %s5569_s15 = inlined_call_operand.vmem [shape: f32[2,1,32], index: 15, kind: input, shape index: {}]   ;;  %s5570_s16 = inlined_call_operand.vmem [shape: f32[2,1,32], index: 16, kind: input, shape index: {}]   ;;  %s5571_s17 = inlined_call_operand.hbm [shape: f32[16,32], index: 17, kind: output, shape index: {}]  }
   0x1   :  { %5578 = sst [smem:[#allocation9_spill]] %s5554_s0 }
   0x2   :  { %5579 = sst [smem:[#allocation10_spill]] %s5555_s1 }
   0x3   :  { %5580 = sst [smem:[#allocation11_spill]] %s5557_s3 }
   0x4   :  { %5581 = sst [smem:[#allocation12_spill]] %s5558_s4 }
   0x5   :  { %5582 = sst [smem:[#allocation13_spill]] %s5559_s5 }
   0x6   :  { %5583 = sst [smem:[#allocation14_spill]] %s5561_s7 }
   0x7   :  { %5584 = sst [smem:[#allocation15_spill]] %s5571_s17 }
   0x8   :  { %22 = vsyncpa [#allocation3], 0  ;;  %s4691_s24 = smov 0   ;;  %s4693_s25 = smov 0  }
   0x9   :  { %s4695_s26 = smov 0  }
   0xa LB: > { %5585 = sst [smem:[#allocation5_spill]] %s4583_s25  ;;  %s37_s28 = sadd.s32 1, %s4583_s25  ;;  %s4587_s26 = sphi %s4695_s26, %s28_s26   ;;  %s4583_s25 = sphi %s4693_s25, %s5607_s25   ;;  %s4579_s24 = sphi %s4691_s24, %s5606_s24  }
   0xb   : > { %5586 = sst [smem:[#allocation6_spill]] %s4587_s26  ;;  %p38_p0 = scmp.ge.s32.totalorder %s37_s28, 2 }
   0xc   : > { %p3753_p1 = scmp.ge.s32.totalorder %s4587_s26, 1  ;;  %p616_p2 = scmp.lt.s32.totalorder %s4587_s26, 3 }
   0xd   : > { %s5609_s28 = smov (%p38_p0, %s37_s28), 0 }
   0xe   : > { %5587 = sst [smem:[#allocation7_spill]] %s5609_s28  ;;  %p617_p3 = pnand %p3753_p1, %p616_p2 }
  0x10   : > { %620 = sbr.rel (%p617_p3) target bundleno = 2945 (0xb81), region = 88 }
  0x15   : > { %p724_p4 = scmp.lt.s32.totalorder %s4579_s24, 1  ;;  %s5588_s5 = sld [smem:[#allocation13_spill]] }
  0x16   : > { %s5589_s7 = sld [smem:[#allocation14_spill]]  ;;  %p3762_p5 = scmp.ne.s32.totalorder %s4579_s24, 0 }
  0x17   : > { %s4710_s29 = scalar_select %p724_p4, %s4579_s24, 1 }
  0x18   : > { %s5592_s19 = sld [smem:[#allocation9_spill]] (!%p3762_p5) }
  0x19   : > { %s3940_s0 = sshll.u32 %s4710_s29, 4  ;;  %s761_s30 = scalar_lea.vmem %s5568_s14, %s4710_s29 }
  0x1a   : > { %s764_s1 = scalar_lea.vmem %s5569_s15, %s4710_s29  ;;  %s767_s3 = scalar_lea.vmem %s5570_s16, %s4710_s29 }
  0x1b   : > { %s4720_s21 = scalar_lea.vmem %s5588_s5, %s3940_s0  ;;  %s4742_s5 = scalar_lea.vmem %s5565_s11, %s3940_s0 }
  0x1c   : > { %s4725_s27 = scalar_lea.vmem %s5589_s7, %s3940_s0  ;;  %773 = sbr.rel (%p3762_p5) target bundleno = 376 (0x178), region = 92 }
  0x1d   : > { %5590 = sst [smem:[#allocation8_spill]] %s4725_s27  ;;  %s3943_s27 = sshll.u32 %s4710_s29, 5 }
  0x1e   : > { %s4752_s17 = scalar_lea.vmem %s5567_s13, %s3943_s27  ;;  %s5591_s7 = sld [smem:[#allocation10_spill]] (!%p3762_p5) }
  0x1f   : > { %s5593_s22 = sld [smem:[#allocation11_spill]] (!%p3762_p5) }
  0x21   : > { %v775_v32 = vld [vmem:[%s5592_s19 + $0x8] sm:$0xff]  ;;  %v777_v34 = vld [vmem:[%s5592_s19 + $0x18] sm:$0xff]  ;;  %v774_v37 = vld [vmem:[%s5592_s19] sm:$0xff]  ;;  %vm2186_vm0 = vcmask 261120  }
  0x22   : > { %v791_v33 = vld [vmem:[%s5592_s19 + $0x88] sm:$0xff]  ;;  %v793_v36 = vld [vmem:[%s5592_s19 + $0x98] sm:$0xff]  ;;  %v790_v38 = vld [vmem:[%s5592_s19 + $0x80] sm:$0xff] }
  0x23   : > { %v807_v35 = vpack.c.bf16 %v791_v33, %v775_v32  ;;  %v809_v39 = vpack.c.bf16 %v793_v36, %v777_v34  ;;  %v806_v40 = vpack.c.bf16 %v790_v38, %v774_v37  ;;  %v776_v41 = vld [vmem:[%s5592_s19 + $0x10] sm:$0xff] }
  0x24   : > { %v4344_v0 = vld [vmem:[%s5591_s7 + $0x78] sm:$0xff]   ;;  %v4348_v4 = vld [vmem:[%s5591_s7 + $0x70] sm:$0xff]   ;;  %v4352_v8 = vld [vmem:[%s5591_s7 + $0x68] sm:$0xff]  }
  0x25   : > { %v4345_v1 = vld [vmem:[%s5591_s7 + $0xf8] sm:$0xff]   ;;  %3948 = vmatprep.subr.bf16.mxu0 %v4344_v0  ;;  %v4349_v5 = vld [vmem:[%s5591_s7 + $0xf0] sm:$0xff]   ;;  %v4353_v9 = vld [vmem:[%s5591_s7 + $0xe8] sm:$0xff]   ;;  %1885 = vmatprep.mubr.bf16.mxu0 %v807_v35 }
  0x26   : > { %v4346_v2 = vld [vmem:[%s5591_s7 + $0x38] sm:$0xff]   ;;  %3970 = vmatprep.subr.bf16.mxu1 %v4345_v1  ;;  %v4350_v6 = vld [vmem:[%s5591_s7 + $0x30] sm:$0xff]   ;;  %v4354_v10 = vld [vmem:[%s5591_s7 + $0x28] sm:$0xff]   ;;  %1926 = vmatprep.mubr.bf16.mxu1 %v809_v39 }
  0x27   : > { %v4347_v3 = vld [vmem:[%s5591_s7 + $0xb8] sm:$0xff]   ;;  %3949 = vmatpush3.bf16.msra.mxu0 %v4346_v2  ;;  %v4351_v7 = vld [vmem:[%s5591_s7 + $0xb0] sm:$0xff]   ;;  %v4355_v11 = vld [vmem:[%s5591_s7 + $0xa8] sm:$0xff]  }
  0x28   : > { %3971 = vmatpush3.bf16.msra.mxu1 %v4347_v3  ;;  %3950 = vmatprep.subr.bf16.mxu0 %v4348_v4  ;;  %v4356_v12 = vld [vmem:[%s5591_s7 + $0x60] sm:$0xff]   ;;  %v4360_v16 = vld [vmem:[%s5591_s7 + $0x58] sm:$0xff]   ;;  %v4364_v20 = vld [vmem:[%s5591_s7 + $0x50] sm:$0xff]  }
  0x29   : > { %3972 = vmatprep.subr.bf16.mxu1 %v4349_v5  ;;  %v4357_v13 = vld [vmem:[%s5591_s7 + $0xe0] sm:$0xff]   ;;  %v4361_v17 = vld [vmem:[%s5591_s7 + $0xd8] sm:$0xff]   ;;  %v4365_v21 = vld [vmem:[%s5591_s7 + $0xd0] sm:$0xff]  }
  0x2a   : > { %v4358_v14 = vld [vmem:[%s5591_s7 + $0x20] sm:$0xff]   ;;  %v4362_v18 = vld [vmem:[%s5591_s7 + $0x18] sm:$0xff]   ;;  %v4366_v22 = vld [vmem:[%s5591_s7 + $0x10] sm:$0xff]  }
  0x2b   : > { %3951 = vmatpush3.bf16.msra.mxu0 %v4350_v6  ;;  %v4359_v15 = vld [vmem:[%s5591_s7 + $0xa0] sm:$0xff]   ;;  %v4363_v19 = vld [vmem:[%s5591_s7 + $0x98] sm:$0xff]   ;;  %v4367_v23 = vld [vmem:[%s5591_s7 + $0x90] sm:$0xff]  }
  0x2c   : > { %3973 = vmatpush3.bf16.msra.mxu1 %v4351_v7  ;;  %3952 = vmatprep.subr.bf16.mxu0 %v4352_v8  ;;  %v4368_v24 = vld [vmem:[%s5591_s7 + $0x48] sm:$0xff]   ;;  %v4372_v28 = vld [vmem:[%s5591_s7 + $0x40] sm:$0xff]   ;;  %v792_v42 = vld [vmem:[%s5592_s19 + $0x90] sm:$0xff] }
  0x2d   : > { %3974 = vmatprep.subr.bf16.mxu1 %v4353_v9  ;;  %v4369_v25 = vld [vmem:[%s5591_s7 + $0xc8] sm:$0xff]   ;;  %v4373_v29 = vld [vmem:[%s5591_s7 + $0xc0] sm:$0xff]   ;;  %v808_v43 = vpack.c.bf16 %v792_v42, %v776_v41  ;;  %v4376_v44 = vld [vmem:[%s5591_s7 + $0x178] sm:$0xff]  }
  0x2e   : > { %v4370_v26 = vld [vmem:[%s5591_s7 + $0x8] sm:$0xff]   ;;  %v4374_v30 = vld [vmem:[%s5591_s7] sm:$0xff]   ;;  %v4377_v45 = vld [vmem:[%s5591_s7 + $0x1f8] sm:$0xff]  }
  0x2f   : > { %3953 = vmatpush3.bf16.msra.mxu0 %v4354_v10  ;;  %v4371_v27 = vld [vmem:[%s5591_s7 + $0x88] sm:$0xff]   ;;  %v4375_v31 = vld [vmem:[%s5591_s7 + $0x80] sm:$0xff]   ;;  %v4378_v46 = vld [vmem:[%s5591_s7 + $0x138] sm:$0xff]  }
  0x30   : > { %3975 = vmatpush3.bf16.msra.mxu1 %v4355_v11  ;;  %3954 = vmatprep.subr.bf16.mxu0 %v4356_v12  ;;  %v4379_v47 = vld [vmem:[%s5591_s7 + $0x1b8] sm:$0xff]   ;;  %v4380_v48 = vld [vmem:[%s5591_s7 + $0x170] sm:$0xff]   ;;  %v4384_v52 = vld [vmem:[%s5591_s7 + $0x168] sm:$0xff]  }
  0x31   : > { %3976 = vmatprep.subr.bf16.mxu1 %v4357_v13  ;;  %v4381_v49 = vld [vmem:[%s5591_s7 + $0x1f0] sm:$0xff]   ;;  %v4385_v53 = vld [vmem:[%s5591_s7 + $0x1e8] sm:$0xff]   ;;  %v4388_v56 = vld [vmem:[%s5591_s7 + $0x160] sm:$0xff]  }
  0x32   : > { %v4382_v50 = vld [vmem:[%s5591_s7 + $0x130] sm:$0xff]   ;;  %v4386_v54 = vld [vmem:[%s5591_s7 + $0x128] sm:$0xff]   ;;  %v4389_v57 = vld [vmem:[%s5591_s7 + $0x1e0] sm:$0xff]  }
  0x33   : > { %3955 = vmatpush3.bf16.msra.mxu0 %v4358_v14  ;;  %v4383_v51 = vld [vmem:[%s5591_s7 + $0x1b0] sm:$0xff]   ;;  %v4387_v55 = vld [vmem:[%s5591_s7 + $0x1a8] sm:$0xff]   ;;  %v4390_v58 = vld [vmem:[%s5591_s7 + $0x120] sm:$0xff]  }
  0x34   : > { %3977 = vmatpush3.bf16.msra.mxu1 %v4359_v15  ;;  %3956 = vmatprep.subr.bf16.mxu0 %v4360_v16  ;;  %v4391_v59 = vld [vmem:[%s5591_s7 + $0x1a0] sm:$0xff]   ;;  %v4392_v60 = vld [vmem:[%s5591_s7 + $0x158] sm:$0xff]   ;;  %v4396_v0 = vld [vmem:[%s5591_s7 + $0x150] sm:$0xff]  }
  0x35   : > { %3978 = vmatprep.subr.bf16.mxu1 %v4361_v17  ;;  %v4393_v61 = vld [vmem:[%s5591_s7 + $0x1d8] sm:$0xff]   ;;  %v4397_v1 = vld [vmem:[%s5591_s7 + $0x1d0] sm:$0xff]   ;;  %v4400_v4 = vld [vmem:[%s5591_s7 + $0x148] sm:$0xff]  }
  0x36   : > { %v4394_v62 = vld [vmem:[%s5591_s7 + $0x118] sm:$0xff]   ;;  %v4398_v2 = vld [vmem:[%s5591_s7 + $0x110] sm:$0xff]   ;;  %v4401_v5 = vld [vmem:[%s5591_s7 + $0x1c8] sm:$0xff]  }
  0x37   : > { %3957 = vmatpush3.bf16.msra.mxu0 %v4362_v18  ;;  %v4395_v63 = vld [vmem:[%s5591_s7 + $0x198] sm:$0xff]   ;;  %v4399_v3 = vld [vmem:[%s5591_s7 + $0x190] sm:$0xff]   ;;  %v4402_v6 = vld [vmem:[%s5591_s7 + $0x108] sm:$0xff]  }
  0x38   : > { %3979 = vmatpush3.bf16.msra.mxu1 %v4363_v19  ;;  %3958 = vmatprep.subr.bf16.mxu0 %v4364_v20  ;;  %v4403_v7 = vld [vmem:[%s5591_s7 + $0x188] sm:$0xff]   ;;  %v4404_v8 = vld [vmem:[%s5591_s7 + $0x140] sm:$0xff]   ;;  %v781_v14 = vld [vmem:[%s5592_s19 + $0x38] sm:$0xff] }
  0x39   : > { %3980 = vmatprep.subr.bf16.mxu1 %v4365_v21  ;;  %v4405_v9 = vld [vmem:[%s5591_s7 + $0x1c0] sm:$0xff]   ;;  %v779_v12 = vld [vmem:[%s5592_s19 + $0x28] sm:$0xff]  ;;  %v797_v15 = vld [vmem:[%s5592_s19 + $0xb8] sm:$0xff] }
  0x3a   : > { %v4406_v10 = vld [vmem:[%s5591_s7 + $0x100] sm:$0xff]   ;;  %v795_v13 = vld [vmem:[%s5592_s19 + $0xa8] sm:$0xff]  ;;  %v813_v17 = vpack.c.bf16 %v797_v15, %v781_v14  ;;  %v780_v20 = vld [vmem:[%s5592_s19 + $0x30] sm:$0xff] }
  0x3b   : > { %3959 = vmatpush3.bf16.msra.mxu0 %v4366_v22  ;;  %v4407_v11 = vld [vmem:[%s5591_s7 + $0x180] sm:$0xff]   ;;  %v811_v16 = vpack.c.bf16 %v795_v13, %v779_v12  ;;  %v796_v22 = vld [vmem:[%s5592_s19 + $0xb0] sm:$0xff]  ;;  %v4416_v32 = vld [vmem:[%s5591_s7 + $0x268] sm:$0xff]  }
  0x3c   : > { %3981 = vmatpush3.bf16.msra.mxu1 %v4367_v23  ;;  %3960 = vmatprep.subr.bf16.mxu0 %v4368_v24  ;;  %v778_v18 = vld [vmem:[%s5592_s19 + $0x20] sm:$0xff]  ;;  %v812_v23 = vpack.c.bf16 %v796_v22, %v780_v20  ;;  %v4408_v24 = vld [vmem:[%s5591_s7 + $0x278] sm:$0xff]   ;;  %v4417_v33 = vld [vmem:[%s5591_s7 + $0x2e8] sm:$0xff]  }
  0x3d   : > { %3982 = vmatprep.subr.bf16.mxu1 %v4369_v25  ;;  %v794_v19 = vld [vmem:[%s5592_s19 + $0xa0] sm:$0xff]  ;;  %v4409_v25 = vld [vmem:[%s5591_s7 + $0x2f8] sm:$0xff]   ;;  %v4418_v34 = vld [vmem:[%s5591_s7 + $0x228] sm:$0xff]  }
  0x3e   : > { %v810_v21 = vpack.c.bf16 %v794_v19, %v778_v18  ;;  %v4419_v35 = vld [vmem:[%s5591_s7 + $0x2a8] sm:$0xff]   ;;  %v4420_v36 = vld [vmem:[%s5591_s7 + $0x260] sm:$0xff]   ;;  %v4425_v41 = vld [vmem:[%s5591_s7 + $0x2d8] sm:$0xff]  }
  0x3f   : > { %3961 = vmatpush3.bf16.msra.mxu0 %v4370_v26  ;;  %v4410_v26 = vld [vmem:[%s5591_s7 + $0x238] sm:$0xff]   ;;  %v4421_v37 = vld [vmem:[%s5591_s7 + $0x2e0] sm:$0xff]   ;;  %v4448_v12 = vld [vmem:[%s5591_s7 + $0x368] sm:$0xff]  }
  0x40   : > { %3983 = vmatpush3.bf16.msra.mxu1 %v4371_v27  ;;  %3962 = vmatprep.subr.bf16.mxu0 %v4372_v28  ;;  %v4411_v27 = vld [vmem:[%s5591_s7 + $0x2b8] sm:$0xff]   ;;  %v4412_v28 = vld [vmem:[%s5591_s7 + $0x270] sm:$0xff]   ;;  %v4422_v38 = vld [vmem:[%s5591_s7 + $0x220] sm:$0xff]  }
  0x41   : > { %3984 = vmatprep.subr.bf16.mxu1 %v4373_v29  ;;  %v4413_v29 = vld [vmem:[%s5591_s7 + $0x2f0] sm:$0xff]   ;;  %v4423_v39 = vld [vmem:[%s5591_s7 + $0x2a0] sm:$0xff]   ;;  %v4426_v42 = vld [vmem:[%s5591_s7 + $0x218] sm:$0xff]  }
  0x42   : > { %v4449_v13 = vld [vmem:[%s5591_s7 + $0x3e8] sm:$0xff]   ;;  %v4454_v18 = vld [vmem:[%s5591_s7 + $0x320] sm:$0xff]   ;;  %v4456_v20 = vld [vmem:[%s5591_s7 + $0x358] sm:$0xff]  }
  0x43   : > { %3963 = vmatpush3.bf16.msra.mxu0 %v4374_v30  ;;  %v4414_v30 = vld [vmem:[%s5591_s7 + $0x230] sm:$0xff]   ;;  %v4450_v14 = vld [vmem:[%s5591_s7 + $0x328] sm:$0xff]   ;;  %v4455_v19 = vld [vmem:[%s5591_s7 + $0x3a0] sm:$0xff]  }
  0x44   : > { %3985 = vmatpush3.bf16.msra.mxu1 %v4375_v31  ;;  %3992 = vmatprep.subr.bf16.mxu0 %v4376_v44  ;;  %v4415_v31 = vld [vmem:[%s5591_s7 + $0x2b0] sm:$0xff]   ;;  %v4451_v15 = vld [vmem:[%s5591_s7 + $0x3a8] sm:$0xff]   ;;  %v4458_v22 = vld [vmem:[%s5591_s7 + $0x318] sm:$0xff]  }
  0x45   : > { %4014 = vmatprep.subr.bf16.mxu1 %v4377_v45  ;;  %v4428_v44 = vld [vmem:[%s5591_s7 + $0x250] sm:$0xff]  }
  0x46   : > { %1886 = vmatmul.mubr.bf16.vlgmr.msra.gmra.mxu0 %v806_v40  ;;  %v4424_v40 = vld [vmem:[%s5591_s7 + $0x258] sm:$0xff]   ;;  %v4429_v45 = vld [vmem:[%s5591_s7 + $0x2d0] sm:$0xff]  }
  0x47   : > { %1927 = vmatmul.mubr.bf16.vlgmr.msra.gmra.mxu1 %v808_v43  ;;  %3993 = vmatpush3.bf16.msra.mxu0 %v4378_v46  ;;  %v4427_v43 = vld [vmem:[%s5591_s7 + $0x298] sm:$0xff]   ;;  %v4430_v46 = vld [vmem:[%s5591_s7 + $0x210] sm:$0xff]  }
  0x48   : > { %4015 = vmatpush3.bf16.msra.mxu1 %v4379_v47  ;;  %3994 = vmatprep.subr.bf16.mxu0 %v4380_v48  ;;  %v4431_v47 = vld [vmem:[%s5591_s7 + $0x290] sm:$0xff]   ;;  %v4432_v48 = vld [vmem:[%s5591_s7 + $0x248] sm:$0xff]  }
  0x49   : > { %4016 = vmatprep.subr.bf16.mxu1 %v4381_v49  ;;  %1967 = vmatprep.mubr.bf16.mxu0 %v811_v16  ;;  %v4433_v49 = vld [vmem:[%s5591_s7 + $0x2c8] sm:$0xff]   ;;  %v4452_v16 = vld [vmem:[%s5591_s7 + $0x360] sm:$0xff]  }
  0x4a   : > { %2008 = vmatprep.mubr.bf16.mxu1 %v813_v17  ;;  %v4453_v17 = vld [vmem:[%s5591_s7 + $0x3e0] sm:$0xff]  }
  0x4b   : > { %3995 = vmatpush3.bf16.msra.mxu0 %v4382_v50  ;;  %v4434_v50 = vld [vmem:[%s5591_s7 + $0x208] sm:$0xff]  }
  0x4c   : > { %4017 = vmatpush3.bf16.msra.mxu1 %v4383_v51  ;;  %3996 = vmatprep.subr.bf16.mxu0 %v4384_v52  ;;  %v4435_v51 = vld [vmem:[%s5591_s7 + $0x288] sm:$0xff]   ;;  %v4436_v52 = vld [vmem:[%s5591_s7 + $0x240] sm:$0xff]  }
  0x4d   : > { %4018 = vmatprep.subr.bf16.mxu1 %v4385_v53  ;;  %v4437_v53 = vld [vmem:[%s5591_s7 + $0x2c0] sm:$0xff]  }
  0x4f   : > { %3997 = vmatpush3.bf16.msra.mxu0 %v4386_v54  ;;  %v4438_v54 = vld [vmem:[%s5591_s7 + $0x200] sm:$0xff]  }
  0x50   : > { %4019 = vmatpush3.bf16.msra.mxu1 %v4387_v55  ;;  %3998 = vmatprep.subr.bf16.mxu0 %v4388_v56  ;;  %v4439_v55 = vld [vmem:[%s5591_s7 + $0x280] sm:$0xff]   ;;  %v783_v56 = vld [vmem:[%s5592_s19 + $0x48] sm:$0xff] }
  0x51   : > { %4020 = vmatprep.subr.bf16.mxu1 %v4389_v57  ;;  %v799_v57 = vld [vmem:[%s5592_s19 + $0xc8] sm:$0xff] }
  0x53   : > { %3999 = vmatpush3.bf16.msra.mxu0 %v4390_v58  ;;  %v815_v58 = vpack.c.bf16 %v799_v57, %v783_v56 }
  0x54   : > { %4021 = vmatpush3.bf16.msra.mxu1 %v4391_v59  ;;  %4000 = vmatprep.subr.bf16.mxu0 %v4392_v60  ;;  %v785_v59 = vld [vmem:[%s5592_s19 + $0x58] sm:$0xff] }
  0x55   : > { %4022 = vmatprep.subr.bf16.mxu1 %v4393_v61  ;;  %v801_v60 = vld [vmem:[%s5592_s19 + $0xd8] sm:$0xff]  ;;  %v782_v61 = vld [vmem:[%s5592_s19 + $0x40] sm:$0xff] }
  0x57   : > { %4001 = vmatpush3.bf16.msra.mxu0 %v4394_v62  ;;  %v817_v62 = vpack.c.bf16 %v801_v60, %v785_v59 }
  0x58   : > { %4023 = vmatpush3.bf16.msra.mxu1 %v4395_v63  ;;  %4002 = vmatprep.subr.bf16.mxu0 %v4396_v0  ;;  %v798_v63 = vld [vmem:[%s5592_s19 + $0xc0] sm:$0xff]  ;;  %v784_v0 = vld [vmem:[%s5592_s19 + $0x50] sm:$0xff] }
  0x59   : > { %4024 = vmatprep.subr.bf16.mxu1 %v4397_v1  ;;  %v800_v1 = vld [vmem:[%s5592_s19 + $0xd0] sm:$0xff] }
  0x5b   : > { %4003 = vmatpush3.bf16.msra.mxu0 %v4398_v2  ;;  %v814_v2 = vpack.c.bf16 %v798_v63, %v782_v61 }
  0x5c   : > { %4025 = vmatpush3.bf16.msra.mxu1 %v4399_v3  ;;  %4004 = vmatprep.subr.bf16.mxu0 %v4400_v4  ;;  %v816_v3 = vpack.c.bf16 %v800_v1, %v784_v0  ;;  %v4440_v4 = vld [vmem:[%s5591_s7 + $0x378] sm:$0xff]   ;;  %v3763_v0 = vld [vmem:[%s5556_s2] ss:$0 sm:$0xff] }
  0x5d   : > { %4026 = vmatprep.subr.bf16.mxu1 %v4401_v5  ;;  %v4441_v5 = vld [vmem:[%s5591_s7 + $0x3f8] sm:$0xff]  }
  0x5f   : > { %4005 = vmatpush3.bf16.msra.mxu0 %v4402_v6  ;;  %v4442_v6 = vld [vmem:[%s5591_s7 + $0x338] sm:$0xff]  }
  0x60   : > { %4027 = vmatpush3.bf16.msra.mxu1 %v4403_v7  ;;  %4006 = vmatprep.subr.bf16.mxu0 %v4404_v8  ;;  %v4443_v7 = vld [vmem:[%s5591_s7 + $0x3b8] sm:$0xff]   ;;  %v4444_v8 = vld [vmem:[%s5591_s7 + $0x370] sm:$0xff]  }
  0x61   : > { %4028 = vmatprep.subr.bf16.mxu1 %v4405_v9  ;;  %v4445_v9 = vld [vmem:[%s5591_s7 + $0x3f0] sm:$0xff]  }
  0x63   : > { %4007 = vmatpush3.bf16.msra.mxu0 %v4406_v10  ;;  %v4446_v10 = vld [vmem:[%s5591_s7 + $0x330] sm:$0xff]  }
  0x64   : > { %4029 = vmatpush3.bf16.msra.mxu1 %v4407_v11  ;;  %4036 = vmatprep.subr.bf16.mxu0 %v4408_v24  ;;  %v4447_v11 = vld [vmem:[%s5591_s7 + $0x3b0] sm:$0xff]  }
  0x65   : > { %4058 = vmatprep.subr.bf16.mxu1 %v4409_v25  ;;  %v4460_v24 = vld [vmem:[%s5591_s7 + $0x350] sm:$0xff]  }
  0x66   : > { %1968 = vmatmul.mubr.bf16.vlgmr.msra.gmra.mxu0 %v810_v21  ;;  %v4457_v21 = vld [vmem:[%s5591_s7 + $0x3d8] sm:$0xff]   ;;  %v4461_v25 = vld [vmem:[%s5591_s7 + $0x3d0] sm:$0xff]  }
  0x67   : > { %2009 = vmatmul.mubr.bf16.vlgmr.msra.gmra.mxu1 %v812_v23  ;;  %4037 = vmatpush3.bf16.msra.mxu0 %v4410_v26  ;;  %v4459_v23 = vld [vmem:[%s5591_s7 + $0x398] sm:$0xff]   ;;  %v4462_v26 = vld [vmem:[%s5591_s7 + $0x310] sm:$0xff]  }
  0x68   : > { %4059 = vmatpush3.bf16.msra.mxu1 %v4411_v27  ;;  %4038 = vmatprep.subr.bf16.mxu0 %v4412_v28  ;;  %v4463_v27 = vld [vmem:[%s5591_s7 + $0x390] sm:$0xff]   ;;  %v4464_v28 = vld [vmem:[%s5591_s7 + $0x348] sm:$0xff]  }
  0x69   : > { %4060 = vmatprep.subr.bf16.mxu1 %v4413_v29  ;;  %2049 = vmatprep.mubr.bf16.mxu0 %v815_v58  ;;  %v4465_v29 = vld [vmem:[%s5591_s7 + $0x3c8] sm:$0xff]  }
  0x6a   : > { %2090 = vmatprep.mubr.bf16.mxu1 %v817_v62 }
  0x6b   : > { %4039 = vmatpush3.bf16.msra.mxu0 %v4414_v30  ;;  %v4466_v30 = vld [vmem:[%s5591_s7 + $0x308] sm:$0xff]  }
  0x6c   : > { %4061 = vmatpush3.bf16.msra.mxu1 %v4415_v31  ;;  %4040 = vmatprep.subr.bf16.mxu0 %v4416_v32  ;;  %v4467_v31 = vld [vmem:[%s5591_s7 + $0x388] sm:$0xff]   ;;  %v4468_v32 = vld [vmem:[%s5591_s7 + $0x340] sm:$0xff]  }
  0x6d   : > { %4062 = vmatprep.subr.bf16.mxu1 %v4417_v33  ;;  %v4469_v33 = vld [vmem:[%s5591_s7 + $0x3c0] sm:$0xff]  }
  0x6f   : > { %4041 = vmatpush3.bf16.msra.mxu0 %v4418_v34  ;;  %v4470_v34 = vld [vmem:[%s5591_s7 + $0x300] sm:$0xff]  }
  0x70   : > { %4063 = vmatpush3.bf16.msra.mxu1 %v4419_v35  ;;  %4042 = vmatprep.subr.bf16.mxu0 %v4420_v36  ;;  %v4471_v35 = vld [vmem:[%s5591_s7 + $0x380] sm:$0xff]   ;;  %v787_v36 = vld [vmem:[%s5592_s19 + $0x68] sm:$0xff] }
  0x71   : > { %4064 = vmatprep.subr.bf16.mxu1 %v4421_v37  ;;  %v803_v37 = vld [vmem:[%s5592_s19 + $0xe8] sm:$0xff] }
  0x73   : > { %4043 = vmatpush3.bf16.msra.mxu0 %v4422_v38  ;;  %v789_v38 = vld [vmem:[%s5592_s19 + $0x78] sm:$0xff] }
  0x74   : > { %4065 = vmatpush3.bf16.msra.mxu1 %v4423_v39  ;;  %4044 = vmatprep.subr.bf16.mxu0 %v4424_v40  ;;  %v819_v39 = vpack.c.bf16 %v803_v37, %v787_v36  ;;  %v805_v40 = vld [vmem:[%s5592_s19 + $0xf8] sm:$0xff] }
  0x75   : > { %4066 = vmatprep.subr.bf16.mxu1 %v4425_v41  ;;  %v786_v41 = vld [vmem:[%s5592_s19 + $0x60] sm:$0xff] }
  0x77   : > { %4045 = vmatpush3.bf16.msra.mxu0 %v4426_v42  ;;  %v802_v42 = vld [vmem:[%s5592_s19 + $0xe0] sm:$0xff] }
  0x78   : > { %4067 = vmatpush3.bf16.msra.mxu1 %v4427_v43  ;;  %4046 = vmatprep.subr.bf16.mxu0 %v4428_v44  ;;  %v821_v43 = vpack.c.bf16 %v805_v40, %v789_v38  ;;  %v818_v44 = vpack.c.bf16 %v802_v42, %v786_v41 }
  0x79   : > { %4068 = vmatprep.subr.bf16.mxu1 %v4429_v45  ;;  %v788_v45 = vld [vmem:[%s5592_s19 + $0x70] sm:$0xff] }
  0x7b   : > { %4047 = vmatpush3.bf16.msra.mxu0 %v4430_v46  ;;  %v804_v46 = vld [vmem:[%s5592_s19 + $0xf0] sm:$0xff] }
  0x7c   : > { %4069 = vmatpush3.bf16.msra.mxu1 %v4431_v47  ;;  %4048 = vmatprep.subr.bf16.mxu0 %v4432_v48  ;;  %v820_v47 = vpack.c.bf16 %v804_v46, %v788_v45  ;;  %v2183_v46 = vld [vmem:[%s5593_s22] sm:$0xff] }
  0x7d   : > { %4070 = vmatprep.subr.bf16.mxu1 %v4433_v49 }
  0x7f   : > { %4049 = vmatpush3.bf16.msra.mxu0 %v4434_v50 }
  0x80   : > { %4071 = vmatpush3.bf16.msra.mxu1 %v4435_v51  ;;  %4050 = vmatprep.subr.bf16.mxu0 %v4436_v52 }
  0x81   : > { %4072 = vmatprep.subr.bf16.mxu1 %v4437_v53 }
  0x83   : > { %4051 = vmatpush3.bf16.msra.mxu0 %v4438_v54 }
  0x84   : > { %4073 = vmatpush3.bf16.msra.mxu1 %v4439_v55  ;;  %4080 = vmatprep.subr.bf16.mxu0 %v4440_v4 }
  0x85   : > { %4102 = vmatprep.subr.bf16.mxu1 %v4441_v5 }
  0x86   : > { %2050 = vmatmul.mubr.bf16.vlgmr.msra.gmra.mxu0 %v814_v2 }
  0x87   : > { %2091 = vmatmul.mubr.bf16.vlgmr.msra.gmra.mxu1 %v816_v3  ;;  %4081 = vmatpush3.bf16.msra.mxu0 %v4442_v6 }
  0x88   : > { %4103 = vmatpush3.bf16.msra.mxu1 %v4443_v7  ;;  %4082 = vmatprep.subr.bf16.mxu0 %v4444_v8 }
  0x89   : > { %4104 = vmatprep.subr.bf16.mxu1 %v4445_v9  ;;  %2131 = vmatprep.mubr.bf16.mxu0 %v819_v39 }
  0x8a   : > { %2172 = vmatprep.mubr.bf16.mxu1 %v821_v43 }
  0x8b   : > { %4083 = vmatpush3.bf16.msra.mxu0 %v4446_v10 }
  0x8c   : > { %4105 = vmatpush3.bf16.msra.mxu1 %v4447_v11  ;;  %4084 = vmatprep.subr.bf16.mxu0 %v4448_v12 }
  0x8d   : > { %4106 = vmatprep.subr.bf16.mxu1 %v4449_v13 }
  0x8f   : > { %4085 = vmatpush3.bf16.msra.mxu0 %v4450_v14 }
  0x90   : > { %4107 = vmatpush3.bf16.msra.mxu1 %v4451_v15  ;;  %4086 = vmatprep.subr.bf16.mxu0 %v4452_v16 }
  0x91   : > { %4108 = vmatprep.subr.bf16.mxu1 %v4453_v17 }
  0x93   : > { %4087 = vmatpush3.bf16.msra.mxu0 %v4454_v18 }
  0x94   : > { %4109 = vmatpush3.bf16.msra.mxu1 %v4455_v19  ;;  %4088 = vmatprep.subr.bf16.mxu0 %v4456_v20 }
  0x95   : > { %4110 = vmatprep.subr.bf16.mxu1 %v4457_v21 }
  0x97   : > { %4089 = vmatpush3.bf16.msra.mxu0 %v4458_v22 }
  0x98   : > { %4111 = vmatpush3.bf16.msra.mxu1 %v4459_v23  ;;  %4090 = vmatprep.subr.bf16.mxu0 %v4460_v24 }
  0x99   : > { %4112 = vmatprep.subr.bf16.mxu1 %v4461_v25 }
  0x9b   : > { %4091 = vmatpush3.bf16.msra.mxu0 %v4462_v26 }
  0x9c   : > { %4113 = vmatpush3.bf16.msra.mxu1 %v4463_v27  ;;  %4092 = vmatprep.subr.bf16.mxu0 %v4464_v28 }
  0x9d   : > { %4114 = vmatprep.subr.bf16.mxu1 %v4465_v29 }
  0x9f   : > { %4093 = vmatpush3.bf16.msra.mxu0 %v4466_v30 }
  0xa0   : > { %4115 = vmatpush3.bf16.msra.mxu1 %v4467_v31  ;;  %4094 = vmatprep.subr.bf16.mxu0 %v4468_v32 }
  0xa1   : > { %4116 = vmatprep.subr.bf16.mxu1 %v4469_v33 }
  0xa3   : > { %4095 = vmatpush3.bf16.msra.mxu0 %v4470_v34 }
  0xa4   : > { %4117 = vmatpush3.bf16.msra.mxu1 %v4471_v35 }
  0xa6   : > { %2132 = vmatmul.mubr.bf16.vlgmr.msra.gmra.mxu0 %v818_v44 }
  0xa7   : > { %2173 = vmatmul.mubr.bf16.vlgmr.msra.gmra.mxu1 %v820_v47 }
 0x106   : > { %v3964_v48 = vpop.f32.mrf.mxu0 }
 0x107   : > { %v3986_v49 = vpop.f32.mrf.mxu1 }
 0x108   : > { %v3965_v50 = vpop.f32.mrf.mxu0 }
 0x109   : > { %v3987_v51 = vpop.f32.mrf.mxu1  ;;  %v3966_v63 = vadd.f32 %v3965_v50, %v3964_v48 }
 0x10a   : > { %v3967_v52 = vpop.f32.mrf.mxu0  ;;  %v3988_v4 = vadd.f32 %v3987_v51, %v3986_v49 }
 0x10b   : > { %v3989_v53 = vpop.f32.mrf.mxu1  ;;  %v1888_v3 = vadd.f32 %v3966_v63, %v3763_v0 }
 0x10c   : > { %v3968_v54 = vpop.f32.mrf.mxu0 }
 0x10d   : > { %v3990_v56 = vpop.f32.mrf.mxu1  ;;  %v3969_v5 = vadd.f32 %v3968_v54, %v3967_v52  ;;  %v1929_v9 = vadd.f32 %v3988_v4, %v1888_v3 }
 0x10e   : > { %v3991_v13 = vadd.f32 %v3990_v56, %v3989_v53 }
 0x10f   : > { %v1891_v10 = vadd.f32 %v3969_v5, %v3763_v0 }
 0x111   : > { %v1932_v17 = vadd.f32 %v3991_v13, %v1891_v10 }
 0x126   : > { %v4008_v55 = vpop.f32.mrf.mxu0 }
 0x127   : > { %v4030_v57 = vpop.f32.mrf.mxu1 }
 0x128   : > { %v4009_v58 = vpop.f32.mrf.mxu0 }
 0x129   : > { %v4031_v59 = vpop.f32.mrf.mxu1  ;;  %v4010_v8 = vadd.f32 %v4009_v58, %v4008_v55 }
 0x12a   : > { %v4011_v60 = vpop.f32.mrf.mxu0  ;;  %v4032_v15 = vadd.f32 %v4031_v59, %v4030_v57 }
 0x12b   : > { %v4033_v61 = vpop.f32.mrf.mxu1  ;;  %v1970_v14 = vadd.f32 %v4010_v8, %v1929_v9 }
 0x12c   : > { %v4012_v62 = vpop.f32.mrf.mxu0 }
 0x12d   : > { %v4034_v2 = vpop.f32.mrf.mxu1  ;;  %v4013_v16 = vadd.f32 %v4012_v62, %v4011_v60  ;;  %v2011_v21 = vadd.f32 %v4032_v15, %v1970_v14 }
 0x12e   : > { %v4035_v23 = vadd.f32 %v4034_v2, %v4033_v61 }
 0x12f   : > { %v1973_v22 = vadd.f32 %v4013_v16, %v1932_v17 }
 0x131   : > { %v2014_v29 = vadd.f32 %v4035_v23, %v1973_v22 }
 0x146   : > { %v4052_v1 = vpop.f32.mrf.mxu0 }
 0x147   : > { %v4074_v6 = vpop.f32.mrf.mxu1 }
 0x148   : > { %v4053_v7 = vpop.f32.mrf.mxu0 }
 0x149   : > { %v4075_v11 = vpop.f32.mrf.mxu1  ;;  %v4054_v18 = vadd.f32 %v4053_v7, %v4052_v1 }
 0x14a   : > { %v4055_v12 = vpop.f32.mrf.mxu0  ;;  %v4076_v25 = vadd.f32 %v4075_v11, %v4074_v6 }
 0x14b   : > { %v4077_v19 = vpop.f32.mrf.mxu1  ;;  %v2052_v24 = vadd.f32 %v4054_v18, %v2011_v21 }
 0x14c   : > { %v4056_v20 = vpop.f32.mrf.mxu0 }
 0x14d   : > { %v4057_v26 = vadd.f32 %v4056_v20, %v4055_v12  ;;  %v4078_v27 = vpop.f32.mrf.mxu1  ;;  %v2093_v32 = vadd.f32 %v4076_v25, %v2052_v24 }
 0x14e   : > { %v4079_v37 = vadd.f32 %v4078_v27, %v4077_v19 }
 0x14f   : > { %v2055_v33 = vadd.f32 %v4057_v26, %v2014_v29 }
 0x151   : > { %v2096_v42 = vadd.f32 %v4079_v37, %v2055_v33 }
 0x166   : > { %v4096_v28 = vpop.f32.mrf.mxu0 }
 0x167   : > { %v4118_v30 = vpop.f32.mrf.mxu1 }
 0x168   : > { %v4097_v31 = vpop.f32.mrf.mxu0 }
 0x169   : > { %v4098_v34 = vadd.f32 %v4097_v31, %v4096_v28  ;;  %v4119_v35 = vpop.f32.mrf.mxu1 }
 0x16a   : > { %v4099_v36 = vpop.f32.mrf.mxu0  ;;  %v4120_v39 = vadd.f32 %v4119_v35, %v4118_v30 }
 0x16b   : > { %v2134_v38 = vadd.f32 %v4098_v34, %v2093_v32  ;;  %v4121_v40 = vpop.f32.mrf.mxu1 }
 0x16c   : > { %v4100_v41 = vpop.f32.mrf.mxu0 }
 0x16d   : > { %v2175_v43 = vadd.f32 %v4120_v39, %v2134_v38  ;;  %v4101_v44 = vadd.f32 %v4100_v41, %v4099_v36  ;;  %v4122_v45 = vpop.f32.mrf.mxu1 }
 0x16e   : > { %v4123_v49 = vadd.f32 %v4122_v45, %v4121_v40 }
 0x16f   : > { %v2181_v47 = vmul.f32 5.656854, %v2175_v43  ;;  %v2137_v48 = vadd.f32 %v4101_v44, %v2096_v42 }
 0x171   : > { %v2184_v50 = vadd.f32 %v2183_v46, %v2181_v47  ;;  %v2178_v51 = vadd.f32 %v4123_v49, %v2137_v48 }
 0x173   : > { %2187 = vst.msk [vmem:[#allocation2] sm:$0xff] %vm2186_vm0, %v2184_v50  ;;  %v2182_v52 = vmul.f32 5.656854, %v2178_v51 }
 0x175   : > { %v2185_v53 = vadd.f32 %v2183_v46, %v2182_v52 }
 0x177   : > { %2188 = vst.msk [vmem:[#allocation2 + $0x8] sm:$0xff] %vm2186_vm0, %v2185_v53 }
 0x178 PF: > { %v4487_v54 = vld [vmem:[%s4720_s21 + $0x8] sm:$0xff]   ;;  %v4589_v55 = vmov 0.0   ;;  %v4488_v56 = vld [vmem:[%s4720_s21] sm:$0xff]   ;;  %vm4590_vm1 = vmmov 0   ;;  %vm2215_vm2 = vcmask 261120   ;;  %s5594_s27 = scalar_lea.vmem %s5560_s6, %s4710_s29  ;;  %s4591_s25 = smov 104  }
 0x179   : > { %4170 = vmatprep.subr.bf16.mxu0 %v4589_v55  ;;  %4178 = vmatprep.subr.bf16.mxu1 %v4589_v55  ;;  %v3892_v61 = vld [vmem:[%s5594_s27] ss:$0 sm:$0xff]  ;;  %s4592_s28 = smov 120   ;;  %s4593_s4 = smov 96   ;;  %vm2291_vm3 = vcmask 64512   ;;  %vm2812_vm4 = vcmask 1043456  }
 0x17a   : > { %4171 = vmatpush3.bf16.msra.mxu0 %v4487_v54  ;;  %4174 = vmatprep.mubr.msk.bf16.mxu0 %vm4590_vm1, %v4589_v55  ;;  %v5258_v57 = vld [vmem:[#allocation2] sm:$0xff]  ;;  %s4594_s26 = smov 112   ;;  %s4595_s24 = smov 64   ;;  %vm3229_vm5 = vcmask 130048   ;;  %vm3232_vm6 = vcmask 195584   ;;  %vm3458_vm7 = vcmask 523264  }
 0x17b   : > { %4172 = vmatprep.subr.bf16.mxu0 %v4589_v55  ;;  %4180 = vmatprep.mubr.msk.bf16.mxu1 %vm4590_vm1, %v4589_v55  ;;  %s5595_s20 = sld [smem:[#allocation12_spill]]  ;;  %s4596_s27 = smov 8  }
 0x17c   : > { %s5596_s23 = sld [smem:[#allocation8_spill]]  ;;  %s5598_s0 = scalar_lea.vmem %s5563_s9, %s4710_s29 }
 0x17d   : > { %s4599_s22 = smov [#allocation2]  }
 0x17e   : > { %v5260_v58 = vld [vmem:[#allocation2 + $0x8] sm:$0xff]  ;;  %4173 = vmatpush3.bf16.msra.mxu0 %v4488_v56  ;;  %s3560_s21 = sshll.u32 %s4599_s22, 4  ;;  %s3561_s21 = int_to_ptr.vmem [resolvable:$true] %s3560_s21 }
 0x17f   : > { %v2191_v59 = vpack.c.bf16 %v5260_v58, %v5258_v57  ;;  %4184 = vmatprep.subr.bf16.mxu0 %v4589_v55  ;;  %p4544_p10 = scmp.lt.s32.totalorder %s3561_s21, %s3561_s21 }
 0x181   : > { %4175 = vmatmul.mubr.msk.bf16.vlgmr.msra.gmra.mxu0 %vm2215_vm2, %v2191_v59  ;;  %v3904_v42 = vld [vmem:[%s5595_s20] ss:$0 sm:$0xff]  ;;  %v3905_v48 = vld [vmem:[%s5595_s20 + $0x1] ss:$0 sm:$0xff] }
 0x182   : > { %4186 = vmatprep.mubr.msk.bf16.mxu0 %vm4590_vm1, %v4589_v55 }
 0x241   : > { %v2253_v60 = vpop.f32.mrf.mxu0 }
 0x242   : > { %v2254_v0 = vadd.f32 %v3892_v61, %v2253_v60 }
 0x243   : > { %v4176_v62 = vpop.f32.mrf.mxu0 }
 0x244   : > { %v2280_v4 = vpack.c.bf16 %v2254_v0, %v2254_v0 }
 0x245   : > { %v2256_v63 = vpop.f32.mrf.mxu0 }
 0x246   : > { %v2257_v1 = vadd.f32 %v3892_v61, %v2256_v63 }
 0x247   : > { %v4177_v2 = vpop.f32.mrf.mxu0 }
 0x248   : > { %v4482_v3 = vpack.i.bf16 %v2257_v1, %v2254_v0  ;;  %v2281_v5 = vpack.c.bf16 %v2257_v1, %v2257_v1 }
 0x24a   : > { %4483 = vrot.lane.b32.xlu1 %v4482_v3, %s4591_s25  ;;  %4473 = vrot.lane.b32.xlu0 %v4482_v3, %s4592_s28  ;;  %s4597_s25 = smov 16   ;;  %s4598_s28 = smov 24  }
 0x24e   : > { %2289 = vrot.lane.b32.xlu1 %v2280_v4, %s4593_s4  ;;  %4478 = vrot.lane.b32.xlu0 %v4482_v3, %s4594_s26 }
 0x252   : > { %2339 = vrot.lane.b32.xlu0 %v2281_v5, %s4593_s4 }
 0x2bc   : > { %v4484_v6 = vpop.permute.xlu1 %4483  ;;  %v4474_v7 = vpop.permute.xlu0 %4473 }
 0x2bd   : > { %v4476_v8 = vunpack.i.h.bf16 %v4474_v7  ;;  %v4475_v9 = vunpack.i.l.bf16 %v4474_v7  ;;  %v4485_v17 = vunpack.i.l.bf16 %v4484_v6  ;;  %v4486_v20 = vunpack.i.h.bf16 %v4484_v6 }
 0x2bf   : > { %v5278_v10 = vpack.c.bf16 %v4476_v8, %v4476_v8  ;;  %v5280_v11 = vpack.c.bf16 %v4475_v9, %v4475_v9  ;;  %v5297_v23 = vpack.c.bf16 %v4485_v17, %v4485_v17  ;;  %v5300_v24 = vpack.c.bf16 %v4486_v20, %v4486_v20 }
 0x2c0   : > { %v2290_v12 = vpop.permute.xlu1 %2289  ;;  %v4479_v13 = vpop.permute.xlu0 %4478 }
 0x2c1   : > { %v4481_v14 = vunpack.i.h.bf16 %v4479_v13  ;;  %v4480_v15 = vunpack.i.l.bf16 %v4479_v13  ;;  %2388 = vrot.lane.b32.xlu1 %v5280_v11, %s4593_s4  ;;  %2437 = vrot.lane.b32.xlu0 %v5278_v10, %s4593_s4  ;;  %v2296_v16 = vsel %vm2291_vm3, %v2290_v12, 0 }
 0x2c2   : > { %4179 = vmatpush3.bf16.xpose.msra.mxu1 %v2296_v16 }
 0x2c3   : > { %v5287_v18 = vpack.c.bf16 %v4481_v14, %v4481_v14  ;;  %v5289_v19 = vpack.c.bf16 %v4480_v15, %v4480_v15  ;;  %4190 = vmatprep.subr.bf16.mxu1 %v4589_v55 }
 0x2c4   : > { %v2340_v21 = vpop.permute.xlu0 %2339 }
 0x2c5   : > { %v2345_v22 = vsel %vm2291_vm3, %v2340_v21, 0  ;;  %2486 = vrot.lane.b32.xlu1 %v5289_v19, %s4593_s4  ;;  %2535 = vrot.lane.b32.xlu0 %v5287_v18, %s4593_s4 }
 0x2c6   : > { %4185 = vmatpush3.bf16.xpose.msra.mxu0 %v2345_v22 }
 0x2c7   : > { %4196 = vmatprep.subr.bf16.mxu0 %v4589_v55 }
 0x2c9   : > { %4181 = vmatmul.mubr.msk.bf16.vlgmr.msra.gmra.mxu1 %vm2291_vm3, %v2280_v4  ;;  %2584 = vrot.lane.b32.xlu1 %v5297_v23, %s4593_s4 }
 0x2ca   : > { %2633 = vrot.lane.b32.xlu0 %v5300_v24, %s4593_s4  ;;  %4192 = vmatprep.mubr.msk.bf16.mxu1 %vm4590_vm1, %v4589_v55  ;;  %s5600_s4 = scalar_lea.vmem %s5566_s12, %s4710_s29 }
 0x2cd   : > { %2856 = vrot.lane.b32.xlu1 %v2281_v5, %s4595_s24  ;;  %4187 = vmatmul.mubr.msk.bf16.vlgmr.msra.gmra.mxu0 %vm2291_vm3, %v2281_v5 }
 0x2ce   : > { %2807 = vrot.lane.b32.xlu0 %v2280_v4, %s4595_s24  ;;  %4198 = vmatprep.mubr.msk.bf16.mxu0 %vm4590_vm1, %v4589_v55 }
 0x333   : > { %v2389_v25 = vpop.permute.xlu1 %2388  ;;  %v2438_v26 = vpop.permute.xlu0 %2437 }
 0x334   : > { %v2394_v27 = vsel %vm2291_vm3, %v2389_v25, 0  ;;  %v2443_v28 = vsel %vm2291_vm3, %v2438_v26, 0 }
 0x335   : > { %4191 = vmatpush3.bf16.xpose.msra.mxu1 %v2394_v27  ;;  %4197 = vmatpush3.bf16.xpose.msra.mxu0 %v2443_v28 }
 0x336   : > { %4202 = vmatprep.subr.bf16.mxu1 %v4589_v55  ;;  %4208 = vmatprep.subr.bf16.mxu0 %v4589_v55 }
 0x337   : > { %v2487_v29 = vpop.permute.xlu1 %2486  ;;  %v2536_v30 = vpop.permute.xlu0 %2535 }
 0x338   : > { %v2492_v31 = vsel %vm2291_vm3, %v2487_v29, 0  ;;  %v2541_v32 = vsel %vm2291_vm3, %v2536_v30, 0 }
 0x33b   : > { %v2585_v33 = vpop.permute.xlu1 %2584 }
 0x33c   : > { %4193 = vmatmul.mubr.msk.bf16.vlgmr.msra.gmra.mxu1 %vm2291_vm3, %v5280_v11  ;;  %4199 = vmatmul.mubr.msk.bf16.vlgmr.msra.gmra.mxu0 %vm2291_vm3, %v5278_v10  ;;  %v2634_v34 = vpop.permute.xlu0 %2633  ;;  %v2590_v35 = vsel %vm2291_vm3, %v2585_v33, 0 }
 0x33d   : > { %4203 = vmatpush3.bf16.xpose.msra.mxu1 %v2492_v31  ;;  %4209 = vmatpush3.bf16.xpose.msra.mxu0 %v2541_v32  ;;  %v2639_v36 = vsel %vm2291_vm3, %v2634_v34, 0 }
 0x33e   : > { %4204 = vmatprep.mubr.msk.bf16.mxu1 %vm4590_vm1, %v4589_v55  ;;  %4210 = vmatprep.mubr.msk.bf16.mxu0 %vm4590_vm1, %v4589_v55 }
 0x33f   : > { %4214 = vmatprep.subr.bf16.mxu1 %v4589_v55  ;;  %4220 = vmatprep.subr.bf16.mxu0 %v4589_v55  ;;  %v2857_v37 = vpop.permute.xlu1 %2856 }
 0x340   : > { %v2808_v38 = vpop.permute.xlu0 %2807  ;;  %v2862_v39 = vsel %vm2812_vm4, %v2857_v37, 0 }
 0x341   : > { %v2814_v40 = vsel %vm2812_vm4, %v2808_v38, 0 }
 0x344   : > { %4205 = vmatmul.mubr.msk.bf16.vlgmr.msra.gmra.mxu1 %vm2291_vm3, %v5289_v19  ;;  %4211 = vmatmul.mubr.msk.bf16.vlgmr.msra.gmra.mxu0 %vm2291_vm3, %v5287_v18 }
 0x345   : > { %4215 = vmatpush3.bf16.xpose.msra.mxu1 %v2590_v35  ;;  %4221 = vmatpush3.bf16.xpose.msra.mxu0 %v2639_v36 }
 0x346   : > { %4216 = vmatprep.mubr.msk.bf16.mxu1 %vm4590_vm1, %v4589_v55  ;;  %4222 = vmatprep.mubr.msk.bf16.mxu0 %vm4590_vm1, %v4589_v55 }
 0x347   : > { %4226 = vmatprep.subr.bf16.mxu1 %v4589_v55  ;;  %4232 = vmatprep.subr.bf16.mxu0 %v4589_v55 }
 0x34c   : > { %4217 = vmatmul.mubr.msk.bf16.vlgmr.msra.gmra.mxu1 %vm2291_vm3, %v5297_v23  ;;  %4223 = vmatmul.mubr.msk.bf16.vlgmr.msra.gmra.mxu0 %vm2291_vm3, %v5300_v24 }
 0x34d   : > { %4227 = vmatpush3.bf16.msra.mxu1 %v2814_v40  ;;  %4233 = vmatpush3.bf16.msra.mxu0 %v2862_v39 }
 0x34e   : > { %4228 = vmatprep.mubr.msk.bf16.mxu1 %vm4590_vm1, %v4589_v55  ;;  %4234 = vmatprep.mubr.msk.bf16.mxu0 %vm4590_vm1, %v4589_v55 }
 0x34f   : > { %4238 = vmatprep.subr.bf16.mxu1 %v4589_v55  ;;  %4244 = vmatprep.subr.bf16.mxu0 %v4589_v55 }
 0x389   : > { %v2332_v41 = vpop.f32.mrf.mxu1 }
 0x38a   : > { %v2683_v43 = vmul.f32 0.35355338, %v2332_v41 }
 0x38b   : > { %v4182_v44 = vpop.f32.mrf.mxu1 }
 0x38c   : > { %v5357_v45 = vadd.f32 %v3904_v42, %v2683_v43 }
 0x38d   : > { %v2335_v46 = vpop.f32.mrf.mxu1  ;;  %v2381_v47 = vpop.f32.mrf.mxu0 }
 0x38e   : > { %v2684_v49 = vmul.f32 0.35355338, %v2381_v47  ;;  %v2711_v50 = vsel %vm2291_vm3, %v5357_v45, -inf }
 0x38f   : > { %v4183_v51 = vpop.f32.mrf.mxu1  ;;  %2712 = vmax.xlane.f32.xlu1 %v2711_v50  ;;  %v4188_v52 = vpop.f32.mrf.mxu0 }
 0x390   : > { %v2704_v53 = vadd.f32 %v3905_v48, %v2684_v49 }
 0x391   : > { %v2384_v54 = vpop.f32.mrf.mxu0 }
 0x392   : > { %v2714_v56 = vsel %vm2291_vm3, %v2704_v53, -inf }
 0x393   : > { %2715 = vmax.xlane.f32.xlu0 %v2714_v56  ;;  %v4189_v59 = vpop.f32.mrf.mxu0 }
 0x3fc   : > { %v2430_v60 = vpop.f32.mrf.mxu1  ;;  %v2479_v61 = vpop.f32.mrf.mxu0 }
 0x3fd   : > { %v2685_v62 = vmul.f32 0.35355338, %v2430_v60  ;;  %v2686_v63 = vmul.f32 0.35355338, %v2479_v61 }
 0x3fe   : > { %v4194_v0 = vpop.f32.mrf.mxu1  ;;  %v4200_v1 = vpop.f32.mrf.mxu0 }
 0x3ff   : > { %v5365_v2 = vadd.f32 %v3904_v42, %v2685_v62  ;;  %v5367_v3 = vadd.f32 %v3905_v48, %v2686_v63 }
 0x400   : > { %v2433_v4 = vpop.f32.mrf.mxu1  ;;  %v2482_v5 = vpop.f32.mrf.mxu0 }
 0x401   : > { %v2717_v6 = vsel %vm2291_vm3, %v5365_v2, -inf  ;;  %v2720_v7 = vsel %vm2291_vm3, %v5367_v3, -inf }
 0x402   : > { %v4195_v8 = vpop.f32.mrf.mxu1  ;;  %2718 = vmax.xlane.f32.xlu0 %v2717_v6  ;;  %2721 = vmax.xlane.f32.xlu1 %v2720_v7  ;;  %v4201_v9 = vpop.f32.mrf.mxu0 }
 0x404   : > { %v2528_v12 = vpop.f32.mrf.mxu1  ;;  %v2577_v13 = vpop.f32.mrf.mxu0 }
 0x405   : > { %v2687_v14 = vmul.f32 0.35355338, %v2528_v12  ;;  %v2688_v15 = vmul.f32 0.35355338, %v2577_v13 }
 0x406   : > { %v4206_v16 = vpop.f32.mrf.mxu1  ;;  %v4212_v17 = vpop.f32.mrf.mxu0 }
 0x407   : > { %v5373_v20 = vadd.f32 %v3904_v42, %v2687_v14  ;;  %v2708_v21 = vadd.f32 %v3905_v48, %v2688_v15 }
 0x408   : > { %v2531_v22 = vpop.f32.mrf.mxu1  ;;  %v2580_v25 = vpop.f32.mrf.mxu0 }
 0x409   : > { %v2723_v26 = vsel %vm2291_vm3, %v5373_v20, -inf  ;;  %v2726_v27 = vsel %vm2291_vm3, %v2708_v21, -inf }
 0x40a   : > { %v4207_v28 = vpop.f32.mrf.mxu1  ;;  %2724 = vmax.xlane.f32.xlu0 %v2723_v26  ;;  %2727 = vmax.xlane.f32.xlu1 %v2726_v27  ;;  %v4213_v29 = vpop.f32.mrf.mxu0 }
 0x40c   : > { %v2626_v30 = vpop.f32.mrf.mxu1  ;;  %v2675_v31 = vpop.f32.mrf.mxu0 }
 0x40d   : > { %v2689_v32 = vmul.f32 0.35355338, %v2626_v30  ;;  %v2690_v33 = vmul.f32 0.35355338, %v2675_v31 }
 0x40e   : > { %v4218_v34 = vpop.f32.mrf.mxu1  ;;  %v4224_v35 = vpop.f32.mrf.mxu0 }
 0x40f   : > { %v5378_v36 = vadd.f32 %v3904_v42, %v2689_v32  ;;  %v2710_v37 = vadd.f32 %v3905_v48, %v2690_v33 }
 0x410   : > { %v2629_v38 = vpop.f32.mrf.mxu1  ;;  %v2678_v39 = vpop.f32.mrf.mxu0 }
 0x411   : > { %v2729_v40 = vsel %vm2291_vm3, %v5378_v36, -inf  ;;  %v2732_v41 = vsel %vm2291_vm3, %v2710_v37, -inf }
 0x412   : > { %v4219_v43 = vpop.f32.mrf.mxu1  ;;  %2730 = vmax.xlane.f32.xlu0 %v2729_v40  ;;  %2733 = vmax.xlane.f32.xlu1 %v2732_v41  ;;  %v4225_v44 = vpop.f32.mrf.mxu0 }
 0x418   : > { %v2713_v42 = vpop.xlane.xlu1 %2712 }
 0x419   : > { %v2735_v47 = vsub.f32 %v5357_v45, %v2713_v42 }
 0x41b   : > { %v2743_v49 = vmul.f32 1.442695, %v2735_v47 }
 0x41c   : > { %v2716_v46 = vpop.xlane.xlu0 %2715 }
 0x41d   : > { %v2736_v48 = vsub.f32 %v2704_v53, %v2716_v46  ;;  %4497 = vpow2.f32 %v2743_v49 }
 0x41f   : > { %v2745_v50 = vmul.f32 1.442695, %v2736_v48 }
 0x421   : > { %4499 = vpow2.f32 %v2745_v50 }
 0x423   : > { %2904 = vrot.lane.b32.xlu1 %v5280_v11, %s4595_s24 }
 0x428   : > { %2952 = vrot.lane.b32.xlu0 %v5278_v10, %s4595_s24 }
 0x42a   : > { %v4498_v51 = vpop.eup %4497 }
 0x42b   : > { %v2759_v54 = vsel %vm2291_vm3, %v4498_v51, 0.0 }
 0x42e   : > { %v4500_v52 = vpop.eup %4499 }
 0x42f   : > { %v2762_v56 = vsel %vm2291_vm3, %v4500_v52, 0.0 }
 0x447   : > { %2760 = vadd.xlane.f32.xlu0 %v2759_v54  ;;  %2763 = vadd.xlane.f32.xlu1 %v2762_v56 }
 0x458   : > { %3000 = vrot.lane.b32.xlu1 %v5289_v19, %s4595_s24 }
 0x48b   : > { %v2719_v10 = vpop.xlane.xlu0 %2718  ;;  %v2722_v11 = vpop.xlane.xlu1 %2721 }
 0x48c   : > { %v2737_v45 = vsub.f32 %v5365_v2, %v2719_v10  ;;  %v2738_v53 = vsub.f32 %v5367_v3, %v2722_v11 }
 0x48e   : > { %v2747_v59 = vmul.f32 1.442695, %v2737_v45  ;;  %v2749_v60 = vmul.f32 1.442695, %v2738_v53 }
 0x490   : > { %4501 = vpow2.f32 %v2747_v59 }
 0x491   : > { %4503 = vpow2.f32 %v2749_v60 }
 0x493   : > { %v2728_v61 = vpop.xlane.xlu1 %2727  ;;  %v2725_v12 = vpop.xlane.xlu0 %2724 }
 0x494   : > { %v2740_v62 = vsub.f32 %v2708_v21, %v2728_v61  ;;  %v2739_v13 = vsub.f32 %v5373_v20, %v2725_v12 }
 0x496   : > { %v2753_v63 = vmul.f32 1.442695, %v2740_v62  ;;  %v2751_v15 = vmul.f32 1.442695, %v2739_v13 }
 0x498   : > { %4505 = vpow2.f32 %v2753_v63 }
 0x49b   : > { %v2734_v0 = vpop.xlane.xlu1 %2733  ;;  %v2731_v14 = vpop.xlane.xlu0 %2730 }
 0x49c   : > { %v2742_v1 = vsub.f32 %v2710_v37, %v2734_v0  ;;  %v2741_v16 = vsub.f32 %v5378_v36, %v2731_v14 }
 0x49d   : > { %v4502_v4 = vpop.eup %4501 }
 0x49e   : > { %v4504_v5 = vpop.eup %4503  ;;  %v2757_v6 = vmul.f32 1.442695, %v2742_v1  ;;  %v2765_v19 = vsel %vm2291_vm3, %v4502_v4, 0.0  ;;  %v2755_v17 = vmul.f32 1.442695, %v2741_v16 }
 0x49f   : > { %2766 = vadd.xlane.f32.xlu0 %v2765_v19  ;;  %v2768_v2 = vsel %vm2291_vm3, %v4504_v5, 0.0  ;;  %v2953_v21 = vpop.permute.xlu0 %2952  ;;  %v2905_v22 = vpop.permute.xlu1 %2904 }
 0x4a0   : > { %2769 = vadd.xlane.f32.xlu1 %v2768_v2  ;;  %4507 = vpow2.f32 %v2757_v6  ;;  %v2910_v34 = vsel %vm2812_vm4, %v2905_v22, 0  ;;  %v2958_v35 = vsel %vm2812_vm4, %v2953_v21, 0 }
 0x4a1   : > { %4509 = vpow2.f32 %v2751_v15 }
 0x4a2   : > { %4511 = vpow2.f32 %v2755_v17 }
 0x4a5   : > { %v5396_v3 = vpop.eup %4505 }
 0x4a6   : > { %v2774_v7 = vsel %vm2291_vm3, %v5396_v3, 0.0 }
 0x4a7   : > { %2775 = vadd.xlane.f32.xlu1 %v2774_v7 }
 0x4ad   : > { %v5400_v8 = vpop.eup %4507 }
 0x4ae   : > { %v2780_v9 = vsel %vm2291_vm3, %v5400_v8, 0.0  ;;  %v5410_v25 = vpop.eup %4509 }
 0x4af   : > { %2781 = vadd.xlane.f32.xlu1 %v2780_v9  ;;  %v5414_v20 = vpop.eup %4511 }
 0x4b5   : > { %3048 = vrot.lane.b32.xlu0 %v5287_v18, %s4595_s24  ;;  %v2771_v18 = vsel %vm2291_vm3, %v5410_v25, 0.0 }
 0x4c0   : > { %3096 = vrot.lane.b32.xlu1 %v5297_v23, %s4595_s24  ;;  %v2777_v23 = vsel %vm2291_vm3, %v5414_v20, 0.0 }
 0x4d0   : > { %v2761_v26 = vpop.xlane.xlu0 %2760  ;;  %v2764_v27 = vpop.xlane.xlu1 %2763 }
 0x4d1   : > { %4513 = vrcp.f32 %v2761_v26 }
 0x4d2   : > { %4515 = vrcp.f32 %v2764_v27 }
 0x4d4   : > { %2772 = vadd.xlane.f32.xlu0 %v2771_v18  ;;  %v3001_v36 = vpop.permute.xlu1 %3000 }
 0x4d5   : > { %v3006_v48 = vsel %vm2812_vm4, %v3001_v36, 0 }
 0x4d8   : > { %2778 = vadd.xlane.f32.xlu0 %v2777_v23 }
 0x4de   : > { %v4514_v28 = vpop.eup %4513 }
 0x4df   : > { %v4516_v29 = vpop.eup %4515  ;;  %v2791_v30 = vmul.f32 %v4514_v28, %v4498_v51 }
 0x4e0   : > { %v2792_v31 = vmul.f32 %v4516_v29, %v4500_v52  ;;  %v4489_v29 = vld [vmem:[%s5596_s23 + $0x8] sm:$0xff]  }
 0x4e1   : > { %v2799_v32 = vpack.c.bf16 %v2791_v30, %v2791_v30  ;;  %v4490_v30 = vld [vmem:[%s5596_s23] sm:$0xff]   ;;  %s5599_s23 = scalar_lea.vmem %s5564_s10, %s4710_s29 }
 0x4e2   : > { %v2800_v33 = vpack.c.bf16 %v2792_v31, %v2792_v31 }
 0x4e3   : > { %4229 = vmatmul.mubr.msk.bf16.vlgmr.msra.gmra.mxu1 %vm2291_vm3, %v2799_v32 }
 0x4e4   : > { %4235 = vmatmul.mubr.msk.bf16.vlgmr.msra.gmra.mxu0 %vm2291_vm3, %v2800_v33  ;;  %4239 = vmatpush3.bf16.msra.mxu1 %v2910_v34 }
 0x4e5   : > { %4245 = vmatpush3.bf16.msra.mxu0 %v2958_v35  ;;  %4240 = vmatprep.mubr.msk.bf16.mxu1 %vm4590_vm1, %v4589_v55 }
 0x4e6   : > { %4246 = vmatprep.mubr.msk.bf16.mxu0 %vm4590_vm1, %v4589_v55  ;;  %4250 = vmatprep.subr.bf16.mxu1 %v4589_v55 }
 0x4e7   : > { %4256 = vmatprep.subr.bf16.mxu0 %v4589_v55 }
 0x4ee   : > { %3144 = vrot.lane.b32.xlu0 %v5300_v24, %s4595_s24  ;;  %s5597_s24 = scalar_lea.vmem %s5562_s8, %s4710_s29 }
 0x528   : > { %v2767_v37 = vpop.xlane.xlu0 %2766 }
 0x529   : > { %4517 = vrcp.f32 %v2767_v37  ;;  %v2770_v38 = vpop.xlane.xlu1 %2769 }
 0x52a   : > { %4519 = vrcp.f32 %v2770_v38 }
 0x52c   : > { %v3049_v42 = vpop.permute.xlu0 %3048 }
 0x52d   : > { %v3054_v24 = vsel %vm2812_vm4, %v3049_v42, 0 }
 0x530   : > { %v2776_v39 = vpop.xlane.xlu1 %2775 }
 0x531   : > { %4521 = vrcp.f32 %v2776_v39 }
 0x536   : > { %v4518_v40 = vpop.eup %4517 }
 0x537   : > { %v4520_v41 = vpop.eup %4519  ;;  %v2793_v43 = vmul.f32 %v4518_v40, %v4502_v4 }
 0x538   : > { %v2794_v44 = vmul.f32 %v4520_v41, %v4504_v5  ;;  %v2782_v52 = vpop.xlane.xlu1 %2781 }
 0x539   : > { %v2801_v46 = vpack.c.bf16 %v2793_v43, %v2793_v43  ;;  %4523 = vrcp.f32 %v2782_v52 }
 0x53a   : > { %v2802_v47 = vpack.c.bf16 %v2794_v44, %v2794_v44 }
 0x53b   : > { %4241 = vmatmul.mubr.msk.bf16.vlgmr.msra.gmra.mxu1 %vm2291_vm3, %v2801_v46 }
 0x53c   : > { %4247 = vmatmul.mubr.msk.bf16.vlgmr.msra.gmra.mxu0 %vm2291_vm3, %v2802_v47  ;;  %4251 = vmatpush3.bf16.msra.mxu1 %v3006_v48  ;;  %v3097_v62 = vpop.permute.xlu1 %3096 }
 0x53d   : > { %4257 = vmatpush3.bf16.msra.mxu0 %v3054_v24  ;;  %4258 = vmatprep.mubr.msk.bf16.mxu0 %vm4590_vm1, %v4589_v55  ;;  %v3102_v1 = vsel %vm2812_vm4, %v3097_v62, 0 }
 0x53e   : > { %4268 = vmatprep.subr.bf16.mxu0 %v4589_v55  ;;  %4252 = vmatprep.mubr.msk.bf16.mxu1 %vm4590_vm1, %v4589_v55  ;;  %v4522_v49 = vpop.eup %4521 }
 0x53f   : > { %4262 = vmatprep.subr.bf16.mxu1 %v4589_v55  ;;  %v2796_v50 = vmul.f32 %v4522_v49, %v5396_v3 }
 0x541   : > { %v2804_v51 = vpack.c.bf16 %v2796_v50, %v2796_v50 }
 0x544   : > { %4259 = vmatmul.mubr.msk.bf16.vlgmr.msra.gmra.mxu0 %vm2291_vm3, %v2804_v51  ;;  %v3918_v51 = vld [vmem:[%s5597_s24] ss:$0 sm:$0xff] }
 0x545   : > { %4270 = vmatprep.mubr.msk.bf16.mxu0 %vm4590_vm1, %v4589_v55 }
 0x546   : > { %v4524_v56 = vpop.eup %4523 }
 0x547   : > { %v2798_v11 = vmul.f32 %v4524_v56, %v5400_v8 }
 0x549   : > { %v2806_v59 = vpack.c.bf16 %v2798_v11, %v2798_v11 }
 0x55d   : > { %v2773_v54 = vpop.xlane.xlu0 %2772 }
 0x55e   : > { %4525 = vrcp.f32 %v2773_v54 }
 0x561   : > { %v2779_v10 = vpop.xlane.xlu0 %2778 }
 0x562   : > { %4527 = vrcp.f32 %v2779_v10 }
 0x565   : > { %v3145_v45 = vpop.permute.xlu0 %3144 }
 0x566   : > { %v3150_v53 = vsel %vm2812_vm4, %v3145_v45, 0 }
 0x567   : > { %4269 = vmatpush3.bf16.msra.mxu0 %v3150_v53 }
 0x568   : > { %4282 = vmatprep.subr.bf16.mxu0 %v4589_v55 }
 0x56a   : > { %4271 = vmatmul.mubr.msk.bf16.vlgmr.msra.gmra.mxu0 %vm2291_vm3, %v2806_v59 }
 0x56b   : > { %v4526_v60 = vpop.eup %4525  ;;  %4286 = vmatprep.mubr.msk.bf16.mxu0 %vm4590_vm1, %v4589_v55 }
 0x56c   : > { %v2795_v61 = vmul.f32 %v4526_v60, %v5410_v25 }
 0x56e   : > { %v2803_v63 = vpack.c.bf16 %v2795_v61, %v2795_v61 }
 0x56f   : > { %v4528_v0 = vpop.eup %4527 }
 0x570   : > { %4253 = vmatmul.mubr.msk.bf16.vlgmr.msra.gmra.mxu1 %vm2291_vm3, %v2803_v63  ;;  %v2797_v4 = vmul.f32 %v4528_v0, %v5414_v20 }
 0x571   : > { %4263 = vmatpush3.bf16.msra.mxu1 %v3102_v1  ;;  %4264 = vmatprep.mubr.msk.bf16.mxu1 %vm4590_vm1, %v4589_v55 }
 0x572   : > { %4274 = vmatprep.subr.bf16.mxu1 %v4589_v55  ;;  %v2805_v5 = vpack.c.bf16 %v2797_v4, %v2797_v4 }
 0x578   : > { %4265 = vmatmul.mubr.msk.bf16.vlgmr.msra.gmra.mxu1 %vm2291_vm3, %v2805_v5 }
 0x579   : > { %4278 = vmatprep.mubr.msk.bf16.mxu1 %vm4590_vm1, %v4589_v55  ;;  %4275 = vmatpush3.bf16.msra.mxu1 %v4489_v29  ;;  %v4494_v29 = vld [vmem:[%s4752_s17 + $0x10] sm:$0xff]  }
 0x57a   : > { %4276 = vmatprep.subr.bf16.mxu1 %v4589_v55 }
 0x57d   : > { %4277 = vmatpush3.bf16.msra.mxu1 %v4490_v30  ;;  %v4495_v30 = vld [vmem:[%s4752_s17 + $0x8] sm:$0xff]  }
 0x57e   : > { %4290 = vmatprep.subr.bf16.mxu1 %v4589_v55 }
 0x5a3   : > { %v2850_v6 = vpop.f32.mrf.mxu1 }
 0x5a4   : > { %v2898_v19 = vpop.f32.mrf.mxu0 }
 0x5a5   : > { %v3944_v2 = vpack.c.bf16 %v2898_v19, %v2850_v6  ;;  %v4230_v3 = vpop.f32.mrf.mxu1 }
 0x5a6   : > { %v4236_v7 = vpop.f32.mrf.mxu0  ;;  %v4492_v3 = vld [vmem:[%s4742_s5] sm:$0xff]  }
 0x5a7   : > { %v2853_v8 = vpop.f32.mrf.mxu1  ;;  %v4493_v7 = vld [vmem:[%s4752_s17 + $0x18] sm:$0xff]  }
 0x5a8   : > { %v2901_v9 = vpop.f32.mrf.mxu0 }
 0x5a9   : > { %v4231_v12 = vpop.f32.mrf.mxu1 }
 0x5aa   : > { %v4237_v13 = vpop.f32.mrf.mxu0 }
 0x5fb   : > { %v2946_v14 = vpop.f32.mrf.mxu1 }
 0x5fc   : > { %v2994_v15 = vpop.f32.mrf.mxu0 }
 0x5fd   : > { %v3945_v16 = vpack.c.bf16 %v2994_v15, %v2946_v14  ;;  %v4242_v17 = vpop.f32.mrf.mxu1 }
 0x5fe   : > { %v4248_v21 = vpop.f32.mrf.mxu0 }
 0x5ff   : > { %3210 = vrot.lane.b32.xlu1 %v3945_v16, %s4596_s27  ;;  %v2949_v22 = vpop.f32.mrf.mxu1  ;;  %v3922_v21 = vld [vmem:[%s5598_s0] ss:$0 sm:$0xff] }
 0x600   : > { %v2997_v25 = vpop.f32.mrf.mxu0 }
 0x601   : > { %v4243_v26 = vpop.f32.mrf.mxu1 }
 0x602   : > { %v4249_v27 = vpop.f32.mrf.mxu0 }
 0x603   : > { %v3923_v27 = vld [vmem:[%s5599_s23] ss:$0 sm:$0xff] }
 0x604   : > { %v3090_v18 = vpop.f32.mrf.mxu0 }
 0x606   : > { %v4260_v20 = vpop.f32.mrf.mxu0 }
 0x608   : > { %v3093_v23 = vpop.f32.mrf.mxu0 }
 0x60a   : > { %v4261_v28 = vpop.f32.mrf.mxu0 }
 0x62a   : > { %v3186_v31 = vpop.f32.mrf.mxu0 }
 0x62c   : > { %v4272_v32 = vpop.f32.mrf.mxu0 }
 0x62d   : > { %v3924_v32 = vld [vmem:[%s5600_s4] ss:$0 sm:$0xff] }
 0x62e   : > { %v3189_v33 = vpop.f32.mrf.mxu0 }
 0x630   : > { %v3042_v34 = vpop.f32.mrf.mxu1  ;;  %v4273_v35 = vpop.f32.mrf.mxu0 }
 0x631   : > { %v3946_v36 = vpack.c.bf16 %v3090_v18, %v3042_v34 }
 0x632   : > { %v4254_v37 = vpop.f32.mrf.mxu1 }
 0x633   : > { %3217 = vrot.lane.b32.xlu0 %v3946_v36, %s4597_s25 }
 0x634   : > { %v3045_v38 = vpop.f32.mrf.mxu1 }
 0x636   : > { %v4255_v39 = vpop.f32.mrf.mxu1 }
 0x638   : > { %v3138_v40 = vpop.f32.mrf.mxu1 }
 0x639   : > { %v3947_v41 = vpack.c.bf16 %v3186_v31, %v3138_v40  ;;  %v4496_v31 = vld [vmem:[%s4752_s17] sm:$0xff]   ;;  %s5601_s17 = sld [smem:[#allocation6_spill]] }
 0x63a   : > { %v4266_v43 = vpop.f32.mrf.mxu1 }
 0x63b   : > { %3224 = vrot.lane.b32.xlu1 %v3947_v41, %s4598_s28 }
 0x63c   : > { %v3141_v44 = vpop.f32.mrf.mxu1 }
 0x63e   : > { %v4267_v42 = vpop.f32.mrf.mxu1 }
 0x63f   : > { %s5602_s23 = sadd.s32 4294967295, %s5601_s17  }
 0x640   : > { %p5528_p6 = scmp.eq.s32.totalorder %s5602_s23, 1 }
 0x671   : > { %v3211_v46 = vpop.permute.xlu1 %3210 }
 0x672   : > { %v3228_v48 = vsel %vm2291_vm3, %v3944_v2, %v3211_v46 }
 0x6a5   : > { %v3218_v47 = vpop.permute.xlu0 %3217 }
 0x6a6   : > { %v3231_v24 = vsel %vm3229_vm5, %v3228_v48, %v3218_v47 }
 0x6ad   : > { %v3225_v49 = vpop.permute.xlu1 %3224 }
 0x6ae   : > { %v3234_v50 = vsel %vm3232_vm6, %v3231_v24, %v3225_v49 }
 0x6af   : > { %4279 = vmatmul.mubr.msk.bf16.vlgmr.msra.gmra.mxu1 %vm2215_vm2, %v3234_v50 }
 0x6b0   : > { %4298 = vmatprep.mubr.msk.bf16.mxu1 %vm4590_vm1, %v4589_v55  ;;  %4291 = vmatpush3.bf16.msra.mxu1 %v4493_v7 }
 0x6b1   : > { %4292 = vmatprep.subr.bf16.mxu1 %v4589_v55 }
 0x6b4   : > { %4293 = vmatpush3.bf16.msra.mxu1 %v4494_v29 }
 0x6b5   : > { %4294 = vmatprep.subr.bf16.mxu1 %v4589_v55 }
 0x6b8   : > { %4295 = vmatpush3.bf16.msra.mxu1 %v4495_v30 }
 0x6b9   : > { %4296 = vmatprep.subr.bf16.mxu1 %v4589_v55 }
 0x6bc   : > { %4297 = vmatpush3.bf16.msra.mxu1 %v4496_v31 }
 0x76f   : > { %v3294_v52 = vpop.f32.mrf.mxu1 }
 0x770   : > { %v3295_v54 = vadd.f32 %v3918_v51, %v3294_v52 }
 0x771   : > { %v4280_v56 = vpop.f32.mrf.mxu1 }
 0x772   : > { %v3301_v10 = vadd.f32 %v3295_v54, %v5258_v57 }
 0x773   : > { %v3297_v11 = vpop.f32.mrf.mxu1 }
 0x774   : > { %v3298_v45 = vadd.f32 %v3918_v51, %v3297_v11  ;;  %v3305_v53 = vsel %vm2215_vm2, %v3301_v10, 0.0 }
 0x775   : > { %3306 = vadd.xlane.f32.xlu0 %v3305_v53  ;;  %v4281_v59 = vpop.f32.mrf.mxu1 }
 0x776   : > { %v3302_v60 = vadd.f32 %v3298_v45, %v5260_v58  ;;  %v4491_v58 = vld [vmem:[%s4742_s5 + $0x8] sm:$0xff]  }
 0x777   : > { %4283 = vmatpush3.bf16.msra.mxu0 %v4491_v58 }
 0x778   : > { %v3308_v61 = vsel %vm2215_vm2, %v3302_v60, 0.0  ;;  %4284 = vmatprep.subr.bf16.mxu0 %v4589_v55  ;;  %v3928_v55 = vld [vmem:[%s761_s30] ss:$0 sm:$0xff] }
 0x779   : > { %3309 = vadd.xlane.f32.xlu1 %v3308_v61 }
 0x77b   : > { %4285 = vmatpush3.bf16.msra.mxu0 %v4492_v3 }
 0x7fe   : > { %v3307_v62 = vpop.xlane.xlu0 %3306 }
 0x7ff   : > { %v3312_v63 = vmul.f32 0.03125, %v3307_v62 }
 0x801   : > { %v3314_v0 = vsub.f32 %v3301_v10, %v3312_v63 }
 0x802   : > { %v3310_v1 = vpop.xlane.xlu1 %3309 }
 0x803   : > { %v3313_v4 = vmul.f32 0.03125, %v3310_v1  ;;  %v3316_v57 = vmul.f32 %v3314_v0, %v3314_v0 }
 0x805   : > { %v3315_v5 = vsub.f32 %v3302_v60, %v3313_v4  ;;  %v3318_v6 = vsel %vm2215_vm2, %v3316_v57, 0.0 }
 0x806   : > { %3319 = vadd.xlane.f32.xlu0 %v3318_v6  ;;  %v3934_v6 = vld [vmem:[%s764_s1] ss:$0 sm:$0xff] }
 0x807   : > { %v3317_v19 = vmul.f32 %v3315_v5, %v3315_v5 }
 0x809   : > { %v3321_v2 = vsel %vm2215_vm2, %v3317_v19, 0.0 }
 0x80a   : > { %3322 = vadd.xlane.f32.xlu0 %v3321_v2  ;;  %v3935_v2 = vld [vmem:[%s767_s3] ss:$0 sm:$0xff]  ;;  %s4537_s3 = scalar_lea.vmem %s3561_s21, 256 }
 0x80b   : > { %p4538_p7 = scmp.ne.s32.totalorder %s3561_s21, %s4537_s3  ;;  %p4545_p11 = scmp.lt.s32.totalorder %s4537_s3, %s4537_s3 }
 0x80d   : > { %p4539_p8 = pnand %p4538_p7, %p5528_p6  ;;  %p4546_p12 = por %p4545_p11, %p4544_p10 }
 0x80f   : > { %p4540_p9 = pneg %p4539_p8 }
 0x811   : > { %p4547_p13 = pnand %p4546_p12, %p4540_p9 }
 0x88f   : > { %v3320_v8 = vpop.xlane.xlu0 %3319 }
 0x890   : > { %v3324_v9 = vmul.f32 0.03125, %v3320_v8 }
 0x892   : > { %v3326_v12 = vadd.f32 1e-05, %v3324_v9 }
 0x893   : > { %v3323_v13 = vpop.xlane.xlu0 %3322 }
 0x894   : > { %4529 = vrsqrt.f32 %v3326_v12  ;;  %v3325_v14 = vmul.f32 0.03125, %v3323_v13 }
 0x896   : > { %v3327_v15 = vadd.f32 1e-05, %v3325_v14 }
 0x898   : > { %4531 = vrsqrt.f32 %v3327_v15 }
 0x8a1   : > { %v4530_v16 = vpop.eup %4529 }
 0x8a2   : > { %v3330_v17 = vmul.f32 %v4530_v16, %v3314_v0 }
 0x8a4   : > { %v3338_v26 = vmul.f32 %v3922_v21, %v3330_v17 }
 0x8a5   : > { %v4532_v22 = vpop.eup %4531 }
 0x8a6   : > { %v3331_v25 = vmul.f32 %v4532_v22, %v3315_v5  ;;  %v3346_v20 = vadd.f32 %v3923_v27, %v3338_v26 }
 0x8a8   : > { %v3339_v18 = vmul.f32 %v3922_v21, %v3331_v25 }
 0x8aa   : > { %v3347_v23 = vadd.f32 %v3923_v27, %v3339_v18 }
 0x8ac   : > { %v3348_v28 = vpack.c.bf16 %v3347_v23, %v3346_v20 }
 0x8ae   : > { %4287 = vmatmul.mubr.msk.bf16.vlgmr.msra.gmra.mxu0 %vm2215_vm2, %v3348_v28 }
 0x96e   : > { %v3409_v33 = vpop.f32.mrf.mxu0 }
 0x96f   : > { %v3410_v35 = vadd.f32 %v3924_v32, %v3409_v33 }
 0x970   : > { %v4288_v34 = vpop.f32.mrf.mxu0 }
 0x971   : > { %v3416_v39 = vmax.f32 %v3410_v35, 0.0 }
 0x972   : > { %v3412_v36 = vpop.f32.mrf.mxu0 }
 0x973   : > { %v3413_v37 = vadd.f32 %v3924_v32, %v3412_v36 }
 0x974   : > { %v4289_v38 = vpop.f32.mrf.mxu0 }
 0x975   : > { %v3417_v40 = vmax.f32 %v3413_v37, 0.0 }
 0x977   : > { %v3418_v41 = vpack.c.bf16 %v3417_v40, %v3416_v39 }
 0x979   : > { %4299 = vmatmul.mubr.msk.bf16.vlgmr.msra.gmra.mxu1 %vm3458_vm7, %v3418_v41 }
 0xa39   : > { %v3496_v43 = vpop.f32.mrf.mxu1 }
 0xa3a   : > { %v3497_v44 = vadd.f32 %v3928_v55, %v3496_v43 }
 0xa3b   : > { %v4300_v42 = vpop.f32.mrf.mxu1 }
 0xa3c   : > { %v3503_v46 = vadd.f32 %v3497_v44, %v3346_v20 }
 0xa3d   : > { %v3499_v47 = vpop.f32.mrf.mxu1 }
 0xa3e   : > { %v3500_v48 = vadd.f32 %v3928_v55, %v3499_v47  ;;  %v3507_v24 = vsel %vm2215_vm2, %v3503_v46, 0.0 }
 0xa3f   : > { %3508 = vadd.xlane.f32.xlu1 %v3507_v24  ;;  %v4301_v49 = vpop.f32.mrf.mxu1 }
 0xa40   : > { %v3504_v50 = vadd.f32 %v3500_v48, %v3347_v23 }
 0xa42   : > { %v3510_v51 = vsel %vm2215_vm2, %v3504_v50, 0.0 }
 0xa43   : > { %3511 = vadd.xlane.f32.xlu0 %v3510_v51 }
 0xac8   : > { %v3509_v52 = vpop.xlane.xlu1 %3508 }
 0xac9   : > { %v3513_v54 = vmul.f32 0.03125, %v3509_v52 }
 0xacb   : > { %v3515_v56 = vsub.f32 %v3503_v46, %v3513_v54 }
 0xacc   : > { %v3512_v10 = vpop.xlane.xlu0 %3511 }
 0xacd   : > { %v3514_v11 = vmul.f32 0.03125, %v3512_v10  ;;  %v3517_v45 = vmul.f32 %v3515_v56, %v3515_v56 }
 0xacf   : > { %v3516_v53 = vsub.f32 %v3504_v50, %v3514_v11  ;;  %v3519_v59 = vsel %vm2215_vm2, %v3517_v45, 0.0 }
 0xad0   : > { %3520 = vadd.xlane.f32.xlu1 %v3519_v59 }
 0xad1   : > { %v3518_v60 = vmul.f32 %v3516_v53, %v3516_v53 }
 0xad3   : > { %v3522_v61 = vsel %vm2215_vm2, %v3518_v60, 0.0 }
 0xad4   : > { %3523 = vadd.xlane.f32.xlu0 %v3522_v61 }
 0xb59   : > { %v3521_v62 = vpop.xlane.xlu1 %3520 }
 0xb5a   : > { %v3525_v63 = vmul.f32 0.03125, %v3521_v62 }
 0xb5c   : > { %v3527_v0 = vadd.f32 1e-05, %v3525_v63 }
 0xb5d   : > { %v3524_v1 = vpop.xlane.xlu0 %3523 }
 0xb5e   : > { %4533 = vrsqrt.f32 %v3527_v0  ;;  %v3526_v4 = vmul.f32 0.03125, %v3524_v1 }
 0xb60   : > { %v3528_v57 = vadd.f32 1e-05, %v3526_v4 }
 0xb62   : > { %4535 = vrsqrt.f32 %v3528_v57 }
 0xb6b   : > { %v4534_v5 = vpop.eup %4533 }
 0xb6c   : > { %v3531_v19 = vmul.f32 %v4534_v5, %v3515_v56 }
 0xb6e   : > { %v3539_v58 = vmul.f32 %v3934_v6, %v3531_v19 }
 0xb6f   : > { %v4536_v3 = vpop.eup %4535 }
 0xb70   : > { %v3532_v7 = vmul.f32 %v4536_v3, %v3516_v53  ;;  %v3547_v8 = vadd.f32 %v3935_v2, %v3539_v58 }
 0xb72   : > { %v3540_v9 = vmul.f32 %v3934_v6, %v3532_v7  ;;  %3549 = vst.msk [vmem:[#allocation2] sm:$0xff] %vm2215_vm2, %v3547_v8 }
 0xb74   : > { %v3548_v12 = vadd.f32 %v3935_v2, %v3540_v9 }
 0xb76   : > { %3550 = vst.msk [vmem:[#allocation2 + $0x8] sm:$0xff] %vm2215_vm2, %v3548_v12 }
 0xb77   : > { %4550 = shalt.err (!%p4547_p13)
}
 0xb78   : > { %s4600_s29 = smov 128   ;;  %s5604_s4 = sld [smem:[#allocation15_spill]] }
 0xb7e   : > { %4303 = dma.vmem_to_hbm [thread:$0]  (%p5528_p6), %s3561_s21, 256, %s5604_s4, [#allocation3], %s4600_s29, %s4600_s29, %s4596_s27  }
 0xb7f   : > { %4574 = dma.done.wait (%p5528_p6), [#allocation3], 256  }
 0xb80   : > { %4576 = vsyncadd (%p5528_p6), [#allocation3], 4294967040 }
 0xb81 PF: > { %s5605_s26 = sld [smem:[#allocation6_spill]] }
 0xb82   : > { %s5606_s24 = sld [smem:[#allocation5_spill]] }
 0xb83   : > { %s5607_s25 = sld [smem:[#allocation7_spill]] }
 0xb87   : > { %s28_s26 = sadd.s32 1, %s5605_s26  }
 0xb88   : > { %p25_p0 = scmp.ge.s32.totalorder %s28_s26, 4  }
 0xb8a   :  { %27 = sbr.rel (!%p25_p0) target bundleno = 10 (0xa), region = 159 }
 0xb8f   :  { %3576 = vsyncpa [#allocation3], 1 }
 0xb90   :  { %3578 = vsyncpa [#allocation3 + $0x1], 1 }

</bundles_post_ra>
